<compile_context>
chip_gen: v6e
topology: v6e:2x2x1
jax: 0.10.0
libtpu: 0.0.40
codegen_flags: <defaults>
</compile_context>

<pallas_src>
import functools

import numpy as np
import jax
import jax.numpy as jnp
from jax.experimental import pallas as pl
from jax.experimental.pallas import tpu as pltpu  # noqa: F401

D_MODEL = 32
N_HEADS = 4
D_K = D_MODEL // N_HEADS
D_FF = 64
LN_EPS = 1e-6
NEG_INF = -1e9


# ---------------------------------------------------------------------------
# Kernel helpers (traced inside the Pallas kernel body)
# ---------------------------------------------------------------------------
def _layer_norm(x, g, b):
    # Annotated-Transformer LayerNorm: unbiased std, eps added to std (not variance).
    mean = jnp.mean(x, axis=-1, keepdims=True)
    var = jnp.sum((x - mean) ** 2, axis=-1, keepdims=True) / (x.shape[-1] - 1)
    inv_std = pl.reciprocal(jnp.sqrt(var) + LN_EPS, approx=True)
    return g * (x - mean) * inv_std + b


def _attend(q, k, v, add_mask, B, S_q, S_k):
    """Scaled-dot-product attention over all batches & heads at once.

    q: (B*S_q, D) already scaled by 1/sqrt(d_k); k, v: (B*S_k, D);
    add_mask: (B, S_q, S_k) or (B, 1, S_k) additive mask (0 keep / -1e9 drop).
    Returns the head-concatenated context (B*S_q, D) (before the Wo projection).
    """
    # Stack every (b, h) score block along the sublane axis -> one softmax pass.
    blocks = []
    for b in range(B):
        qb = q[b * S_q:(b + 1) * S_q, :]
        kb = k[b * S_k:(b + 1) * S_k, :]
        am = add_mask[b]                      # (S_q, S_k) or (1, S_k) -> broadcasts
        for h in range(N_HEADS):
            sl = slice(h * D_K, (h + 1) * D_K)
            s = jax.lax.dot_general(
                qb[:, sl], kb[:, sl], (((1,), (1,)), ((), ())),
                preferred_element_type=jnp.float32)
            blocks.append(s + am)
    scores = jnp.concatenate(blocks, axis=0)  # (B*H*S_q, S_k)
    scores = scores - jnp.max(scores, axis=-1, keepdims=True)
    p = jnp.exp(scores)
    p = p * pl.reciprocal(jnp.sum(p, axis=-1, keepdims=True), approx=True)

    # Per-head p @ v, concatenated back along the lane axis to (S_q, D) per batch.
    outs = []
    for b in range(B):
        vb = v[b * S_k:(b + 1) * S_k, :]
        cols = []
        for h in range(N_HEADS):
            r0 = (b * N_HEADS + h) * S_q
            ph = p[r0:r0 + S_q, :]
            vh = vb[:, h * D_K:(h + 1) * D_K]
            cols.append(jnp.dot(ph, vh, preferred_element_type=jnp.float32))
        outs.append(jnp.concatenate(cols, axis=-1))     # (S_q, D)
    return jnp.concatenate(outs, axis=0)                # (B*S_q, D)


# ---------------------------------------------------------------------------
# Fused decoder-layer kernel: single invocation, whole batch in VMEM.
# ---------------------------------------------------------------------------
def decoder_layer_kernel(x_ref, mem_ref, tgt_am_ref, src_am_ref,
                         ln_g_ref, ln_b_ref,
                         self_wqkv_ref, self_bqkv_ref, self_wo_ref, self_bo_ref,
                         src_wq_ref, src_bq_ref, src_wkv_ref, src_bkv_ref,
                         src_wo_ref, src_bo_ref,
                         w1_ref, b1_ref, w2_ref, b2_ref,
                         out_ref, *, B, S_t, S_s):
    x = x_ref[...]                 # (B*S_t, D)
    mem = mem_ref[...]             # (B*S_s, D)
    tgt_am = tgt_am_ref[...]       # (B, S_t, S_t) additive
    src_am = src_am_ref[...]       # (B, 1, S_s)   additive
    scale = 1.0 / jnp.sqrt(jnp.float32(D_K))

    # Sublayer 0: self-attention (pre-norm residual, dropout = identity).
    xn = _layer_norm(x, ln_g_ref[0:1, :], ln_b_ref[0:1, :])
    qkv = jnp.dot(xn, self_wqkv_ref[...],
                  preferred_element_type=jnp.float32) + self_bqkv_ref[...]
    q = qkv[:, 0:D_MODEL] * scale
    k = qkv[:, D_MODEL:2 * D_MODEL]
    v = qkv[:, 2 * D_MODEL:3 * D_MODEL]
    ctx = _attend(q, k, v, tgt_am, B, S_t, S_t)
    x = x + jnp.dot(ctx, self_wo_ref[...],
                    preferred_element_type=jnp.float32) + self_bo_ref[...]

    # Sublayer 1: source attention (keys/values come from raw memory).
    xn = _layer_norm(x, ln_g_ref[1:2, :], ln_b_ref[1:2, :])
    q = (jnp.dot(xn, src_wq_ref[...],
                 preferred_element_type=jnp.float32) + src_bq_ref[...]) * scale
    kv = jnp.dot(mem, src_wkv_ref[...],
                 preferred_element_type=jnp.float32) + src_bkv_ref[...]
    k = kv[:, 0:D_MODEL]
    v = kv[:, D_MODEL:2 * D_MODEL]
    ctx = _attend(q, k, v, src_am, B, S_t, S_s)
    x = x + jnp.dot(ctx, src_wo_ref[...],
                    preferred_element_type=jnp.float32) + src_bo_ref[...]

    # Sublayer 2: position-wise feed-forward  w2(relu(w1(xn))).
    xn = _layer_norm(x, ln_g_ref[2:3, :], ln_b_ref[2:3, :])
    h = jnp.maximum(
        jnp.dot(xn, w1_ref[...], preferred_element_type=jnp.float32) + b1_ref[...], 0.0)
    ff = jnp.dot(h, w2_ref[...], preferred_element_type=jnp.float32) + b2_ref[...]

    out_ref[...] = (x + ff).astype(out_ref.dtype)


def decoder_layer(x, memory, src_mask, tgt_mask, params):
    B, S_t, D = x.shape
    S_s = memory.shape[1]
    ln_g, ln_b, w_self, b_self, w_src, b_src, w1, b1, w2, b2 = params

    # --- wrapper-side layout / weight fusion (done once, outside the kernel) ---
    x2 = x.reshape(B * S_t, D)
    mem2 = memory.reshape(B * S_s, D)
    tgt_am = (1.0 - tgt_mask) * NEG_INF            # (B, S_t, S_t) additive mask
    src_am = (1.0 - src_mask) * NEG_INF            # (B, 1,  S_s)  additive mask

    self_wqkv = jnp.concatenate([w_self[0], w_self[1], w_self[2]], axis=1)   # (D, 3D)
    self_bqkv = jnp.concatenate([b_self[0], b_self[1], b_self[2]])[None, :]  # (1, 3D)
    self_wo = w_self[3]
    self_bo = b_self[3][None, :]
    src_wq = w_src[0]
    src_bq = b_src[0][None, :]
    src_wkv = jnp.concatenate([w_src[1], w_src[2]], axis=1)                  # (D, 2D)
    src_bkv = jnp.concatenate([b_src[1], b_src[2]])[None, :]                 # (1, 2D)
    src_wo = w_src[3]
    src_bo = b_src[3][None, :]

    kernel = functools.partial(decoder_layer_kernel, B=B, S_t=S_t, S_s=S_s)

    out = pl.pallas_call(
        kernel,
        out_shape=jax.ShapeDtypeStruct((B * S_t, D), x.dtype),
        # No grid: the whole problem (<100 KiB) fits in VMEM on every TPU generation,
        # so all operands are loaded as full blocks and the kernel runs in one step.
    )(x2, mem2, tgt_am, src_am, ln_g, ln_b,
      self_wqkv, self_bqkv, self_wo, self_bo,
      src_wq, src_bq, src_wkv, src_bkv, src_wo, src_bo,
      w1, b1, w2, b2)
    return out.reshape(B, S_t, D)


# ---------------------------------------------------------------------------
# Pure-JAX reference (same math) used to validate the kernel.
# ---------------------------------------------------------------------------
def reference_decoder_layer(x, memory, src_mask, tgt_mask, params):
    ln_g, ln_b, w_self, b_self, w_src, b_src, w1, b1, w2, b2 = params

    def layer_norm(v, g, b):
        mean = jnp.mean(v, axis=-1, keepdims=True)
        var = jnp.sum((v - mean) ** 2, axis=-1, keepdims=True) / (v.shape[-1] - 1)
        return g * (v - mean) / (jnp.sqrt(var) + LN_EPS) + b

    def mha(xq, xkv, mask, w, b):
        B, Sq, D = xq.shape
        Sk = xkv.shape[1]
        q, k, v = xq @ w[0] + b[0], xkv @ w[1] + b[1], xkv @ w[2] + b[2]
        split = lambda t, S: t.reshape(B, S, N_HEADS, D_K).transpose(0, 2, 1, 3)
        qh, kh, vh = split(q, Sq), split(k, Sk), split(v, Sk)
        scores = jnp.einsum("bhqd,bhkd->bhqk", qh, kh) / jnp.sqrt(jnp.float32(D_K))
        scores = jnp.where(mask[:, None, :, :] > 0, scores, NEG_INF)
        p = jax.nn.softmax(scores, axis=-1)
        o = jnp.einsum("bhqk,bhkd->bhqd", p, vh).transpose(0, 2, 1, 3).reshape(B, Sq, D)
        return o @ w[3] + b[3]

    xn = layer_norm(x, ln_g[0], ln_b[0])
    x = x + mha(xn, xn, tgt_mask, w_self, b_self)
    xn = layer_norm(x, ln_g[1], ln_b[1])
    x = x + mha(xn, memory, src_mask, w_src, b_src)
    xn = layer_norm(x, ln_g[2], ln_b[2])
    ff = jnp.maximum(xn @ w1 + b1, 0.0) @ w2 + b2
    return x + ff


if __name__ == "__main__":
    key = jax.random.PRNGKey(0)
    keys = jax.random.split(key, 10)
    B, S_T, S_S = 2, 8, 8

    x = jax.random.normal(keys[0], (B, S_T, D_MODEL), jnp.float32)
    memory = jax.random.normal(keys[1], (B, S_S, D_MODEL), jnp.float32)

    # Causal target mask; source mask with one padded memory position for batch 1.
    tgt_mask = jnp.tile(jnp.tril(jnp.ones((S_T, S_T), jnp.float32))[None], (B, 1, 1))
    src_mask = jnp.ones((B, 1, S_S), jnp.float32).at[1, 0, S_S - 1].set(0.0)

    def rnd(k, shape, scale=0.1):
        return scale * jax.random.normal(k, shape, jnp.float32)

    params = (
        jnp.ones((3, D_MODEL), jnp.float32),    # LN gamma (a_2) x3
        jnp.zeros((3, D_MODEL), jnp.float32),   # LN beta  (b_2) x3
        rnd(keys[2], (4, D_MODEL, D_MODEL)),    # self-attn [Wq,Wk,Wv,Wo]
        rnd(keys[3], (4, D_MODEL)),             # self-attn biases
        rnd(keys[4], (4, D_MODEL, D_MODEL)),    # src-attn  [Wq,Wk,Wv,Wo]
        rnd(keys[5], (4, D_MODEL)),             # src-attn biases
        rnd(keys[6], (D_MODEL, D_FF)),          # FFN w1
        rnd(keys[7], (1, D_FF)),                # FFN b1
        rnd(keys[8], (D_FF, D_MODEL)),          # FFN w2
        rnd(keys[9], (1, D_MODEL)),             # FFN b2
    )

    out = jax.block_until_ready(decoder_layer(x, memory, src_mask, tgt_mask, params))
    ref = reference_decoder_layer(x, memory, src_mask, tgt_mask, params)

    assert out.shape == (B, S_T, D_MODEL)
    np.testing.assert_allclose(np.asarray(out), np.asarray(ref), rtol=2e-2, atol=2e-2)
    print("KERNEL_OK")
</pallas_src>

<mosaic_0001>
module attributes {stable_mosaic.version = 11 : i64} {
  func.func @decoder_layer_kernel(%arg0: memref<16x32xf32, #tpu.memory_space<vmem>>, %arg1: memref<16x32xf32, #tpu.memory_space<vmem>>, %arg2: memref<2x8x8xf32, #tpu.memory_space<vmem>>, %arg3: memref<2x1x8xf32, #tpu.memory_space<vmem>>, %arg4: memref<3x32xf32, #tpu.memory_space<vmem>>, %arg5: memref<3x32xf32, #tpu.memory_space<vmem>>, %arg6: memref<32x96xf32, #tpu.memory_space<vmem>>, %arg7: memref<1x96xf32, #tpu.memory_space<vmem>>, %arg8: memref<32x32xf32, #tpu.memory_space<vmem>>, %arg9: memref<1x32xf32, #tpu.memory_space<vmem>>, %arg10: memref<32x32xf32, #tpu.memory_space<vmem>>, %arg11: memref<1x32xf32, #tpu.memory_space<vmem>>, %arg12: memref<32x64xf32, #tpu.memory_space<vmem>>, %arg13: memref<1x64xf32, #tpu.memory_space<vmem>>, %arg14: memref<32x32xf32, #tpu.memory_space<vmem>>, %arg15: memref<1x32xf32, #tpu.memory_space<vmem>>, %arg16: memref<32x64xf32, #tpu.memory_space<vmem>>, %arg17: memref<1x64xf32, #tpu.memory_space<vmem>>, %arg18: memref<64x32xf32, #tpu.memory_space<vmem>>, %arg19: memref<1x32xf32, #tpu.memory_space<vmem>>, %arg20: memref<16x32xf32, #tpu.memory_space<vmem>>) attributes {dimension_semantics = [], scalar_prefetch = 0 : i64, scratch_operands = 0 : i64, tpu.core_type = #tpu.core_type<tc>} {
    %c0 = arith.constant 0 : index
    %c0_0 = arith.constant 0 : index
    %0 = vector.load %arg0[%c0, %c0_0] : memref<16x32xf32, #tpu.memory_space<vmem>>, vector<16x32xf32>
    %c0_1 = arith.constant 0 : index
    %c0_2 = arith.constant 0 : index
    %1 = vector.load %arg1[%c0_1, %c0_2] : memref<16x32xf32, #tpu.memory_space<vmem>>, vector<16x32xf32>
    %c0_3 = arith.constant 0 : index
    %c0_4 = arith.constant 0 : index
    %c0_5 = arith.constant 0 : index
    %2 = vector.load %arg2[%c0_3, %c0_4, %c0_5] : memref<2x8x8xf32, #tpu.memory_space<vmem>>, vector<2x8x8xf32>
    %c0_6 = arith.constant 0 : index
    %c0_7 = arith.constant 0 : index
    %c0_8 = arith.constant 0 : index
    %3 = vector.load %arg3[%c0_6, %c0_7, %c0_8] : memref<2x1x8xf32, #tpu.memory_space<vmem>>, vector<2x1x8xf32>
    %cst = arith.constant 8.000000e+00 : f32
    %4 = math.sqrt %cst : f32
    %cst_9 = arith.constant 1.000000e+00 : f32
    %5 = arith.divf %cst_9, %4 : f32
    %c0_10 = arith.constant 0 : index
    %c0_11 = arith.constant 0 : index
    %6 = vector.load %arg4[%c0_10, %c0_11] : memref<3x32xf32, #tpu.memory_space<vmem>>, vector<1x32xf32>
    %c0_12 = arith.constant 0 : index
    %c0_13 = arith.constant 0 : index
    %7 = vector.load %arg5[%c0_12, %c0_13] : memref<3x32xf32, #tpu.memory_space<vmem>>, vector<1x32xf32>
    %cst_14 = arith.constant dense<0.000000e+00> : vector<16xf32>
    %8 = vector.multi_reduction <add>, %0, %cst_14 [1] : vector<16x32xf32> to vector<16xf32>
    %9 = vector.shape_cast %8 : vector<16xf32> to vector<16x1xf32>
    %cst_15 = arith.constant 3.200000e+01 : f32
    %10 = vector.broadcast %cst_15 : f32 to vector<16x1xf32>
    %11 = arith.divf %9, %10 : vector<16x1xf32>
    %12 = vector.broadcast %11 : vector<16x1xf32> to vector<16x32xf32>
    %13 = arith.subf %0, %12 : vector<16x32xf32>
    %14 = arith.mulf %13, %13 : vector<16x32xf32>
    %cst_16 = arith.constant dense<0.000000e+00> : vector<16xf32>
    %15 = vector.multi_reduction <add>, %14, %cst_16 [1] : vector<16x32xf32> to vector<16xf32>
    %16 = vector.shape_cast %15 : vector<16xf32> to vector<16x1xf32>
    %cst_17 = arith.constant 3.100000e+01 : f32
    %17 = vector.broadcast %cst_17 : f32 to vector<16x1xf32>
    %18 = arith.divf %16, %17 : vector<16x1xf32>
    %19 = math.sqrt %18 : vector<16x1xf32>
    %cst_18 = arith.constant 9.99999997E-7 : f32
    %20 = vector.broadcast %cst_18 : f32 to vector<16x1xf32>
    %21 = arith.addf %19, %20 : vector<16x1xf32>
    %22 = tpu.reciprocal %21 {approx = true} : vector<16x1xf32> -> vector<16x1xf32>
    %23 = vector.broadcast %11 : vector<16x1xf32> to vector<16x32xf32>
    %24 = arith.subf %0, %23 : vector<16x32xf32>
    %25 = vector.broadcast %6 : vector<1x32xf32> to vector<16x32xf32>
    %26 = arith.mulf %25, %24 : vector<16x32xf32>
    %27 = vector.broadcast %22 : vector<16x1xf32> to vector<16x32xf32>
    %28 = arith.mulf %26, %27 : vector<16x32xf32>
    %29 = vector.broadcast %7 : vector<1x32xf32> to vector<16x32xf32>
    %30 = arith.addf %28, %29 : vector<16x32xf32>
    %c0_19 = arith.constant 0 : index
    %c0_20 = arith.constant 0 : index
    %31 = vector.load %arg6[%c0_19, %c0_20] : memref<32x96xf32, #tpu.memory_space<vmem>>, vector<32x96xf32>
    %cst_21 = arith.constant dense<0.000000e+00> : vector<16x96xf32>
    %32 = tpu.matmul %30, %31, %cst_21 {dimension_numbers = #tpu.dot_dimension_numbers<[1], [0], [0], [1], [0, 0, 1, 1], [], []>} : vector<16x32xf32>, vector<32x96xf32>, vector<16x96xf32> -> vector<16x96xf32>
    %c0_22 = arith.constant 0 : index
    %c0_23 = arith.constant 0 : index
    %33 = vector.load %arg7[%c0_22, %c0_23] : memref<1x96xf32, #tpu.memory_space<vmem>>, vector<1x96xf32>
    %34 = vector.broadcast %33 : vector<1x96xf32> to vector<16x96xf32>
    %35 = arith.addf %32, %34 : vector<16x96xf32>
    %36 = vector.extract_strided_slice %35 {offsets = [0, 0], sizes = [16, 32], strides = [1, 1]} : vector<16x96xf32> to vector<16x32xf32>
    %37 = vector.broadcast %5 : f32 to vector<16x32xf32>
    %38 = arith.mulf %36, %37 : vector<16x32xf32>
    %39 = vector.extract_strided_slice %35 {offsets = [0, 32], sizes = [16, 32], strides = [1, 1]} : vector<16x96xf32> to vector<16x32xf32>
    %40 = vector.extract_strided_slice %35 {offsets = [0, 64], sizes = [16, 32], strides = [1, 1]} : vector<16x96xf32> to vector<16x32xf32>
    %41 = vector.extract_strided_slice %38 {offsets = [0, 0], sizes = [8, 32], strides = [1, 1]} : vector<16x32xf32> to vector<8x32xf32>
    %42 = vector.extract_strided_slice %39 {offsets = [0, 0], sizes = [8, 32], strides = [1, 1]} : vector<16x32xf32> to vector<8x32xf32>
    %43 = vector.extract_strided_slice %2 {offsets = [0, 0, 0], sizes = [1, 8, 8], strides = [1, 1, 1]} : vector<2x8x8xf32> to vector<1x8x8xf32>
    %44 = vector.shape_cast %43 : vector<1x8x8xf32> to vector<8x8xf32>
    %45 = vector.extract_strided_slice %41 {offsets = [0, 0], sizes = [8, 8], strides = [1, 1]} : vector<8x32xf32> to vector<8x8xf32>
    %46 = vector.extract_strided_slice %42 {offsets = [0, 0], sizes = [8, 8], strides = [1, 1]} : vector<8x32xf32> to vector<8x8xf32>
    %cst_24 = arith.constant dense<0.000000e+00> : vector<8x8xf32>
    %47 = tpu.matmul %45, %46, %cst_24 {dimension_numbers = #tpu.dot_dimension_numbers<[1], [1], [0], [0], [0, 0, 1, 0], [], []>} : vector<8x8xf32>, vector<8x8xf32>, vector<8x8xf32> -> vector<8x8xf32>
    %48 = arith.addf %47, %44 : vector<8x8xf32>
    %49 = vector.extract_strided_slice %41 {offsets = [0, 8], sizes = [8, 8], strides = [1, 1]} : vector<8x32xf32> to vector<8x8xf32>
    %50 = vector.extract_strided_slice %42 {offsets = [0, 8], sizes = [8, 8], strides = [1, 1]} : vector<8x32xf32> to vector<8x8xf32>
    %cst_25 = arith.constant dense<0.000000e+00> : vector<8x8xf32>
    %51 = tpu.matmul %49, %50, %cst_25 {dimension_numbers = #tpu.dot_dimension_numbers<[1], [1], [0], [0], [0, 0, 1, 0], [], []>} : vector<8x8xf32>, vector<8x8xf32>, vector<8x8xf32> -> vector<8x8xf32>
    %52 = arith.addf %51, %44 : vector<8x8xf32>
    %53 = vector.extract_strided_slice %41 {offsets = [0, 16], sizes = [8, 8], strides = [1, 1]} : vector<8x32xf32> to vector<8x8xf32>
    %54 = vector.extract_strided_slice %42 {offsets = [0, 16], sizes = [8, 8], strides = [1, 1]} : vector<8x32xf32> to vector<8x8xf32>
    %cst_26 = arith.constant dense<0.000000e+00> : vector<8x8xf32>
    %55 = tpu.matmul %53, %54, %cst_26 {dimension_numbers = #tpu.dot_dimension_numbers<[1], [1], [0], [0], [0, 0, 1, 0], [], []>} : vector<8x8xf32>, vector<8x8xf32>, vector<8x8xf32> -> vector<8x8xf32>
    %56 = arith.addf %55, %44 : vector<8x8xf32>
    %57 = vector.extract_strided_slice %41 {offsets = [0, 24], sizes = [8, 8], strides = [1, 1]} : vector<8x32xf32> to vector<8x8xf32>
    %58 = vector.extract_strided_slice %42 {offsets = [0, 24], sizes = [8, 8], strides = [1, 1]} : vector<8x32xf32> to vector<8x8xf32>
    %cst_27 = arith.constant dense<0.000000e+00> : vector<8x8xf32>
    %59 = tpu.matmul %57, %58, %cst_27 {dimension_numbers = #tpu.dot_dimension_numbers<[1], [1], [0], [0], [0, 0, 1, 0], [], []>} : vector<8x8xf32>, vector<8x8xf32>, vector<8x8xf32> -> vector<8x8xf32>
    %60 = arith.addf %59, %44 : vector<8x8xf32>
    %61 = vector.extract_strided_slice %38 {offsets = [8, 0], sizes = [8, 32], strides = [1, 1]} : vector<16x32xf32> to vector<8x32xf32>
    %62 = vector.extract_strided_slice %39 {offsets = [8, 0], sizes = [8, 32], strides = [1, 1]} : vector<16x32xf32> to vector<8x32xf32>
    %63 = vector.extract_strided_slice %2 {offsets = [1, 0, 0], sizes = [1, 8, 8], strides = [1, 1, 1]} : vector<2x8x8xf32> to vector<1x8x8xf32>
    %64 = vector.shape_cast %63 : vector<1x8x8xf32> to vector<8x8xf32>
    %65 = vector.extract_strided_slice %61 {offsets = [0, 0], sizes = [8, 8], strides = [1, 1]} : vector<8x32xf32> to vector<8x8xf32>
    %66 = vector.extract_strided_slice %62 {offsets = [0, 0], sizes = [8, 8], strides = [1, 1]} : vector<8x32xf32> to vector<8x8xf32>
    %cst_28 = arith.constant dense<0.000000e+00> : vector<8x8xf32>
    %67 = tpu.matmul %65, %66, %cst_28 {dimension_numbers = #tpu.dot_dimension_numbers<[1], [1], [0], [0], [0, 0, 1, 0], [], []>} : vector<8x8xf32>, vector<8x8xf32>, vector<8x8xf32> -> vector<8x8xf32>
    %68 = arith.addf %67, %64 : vector<8x8xf32>
    %69 = vector.extract_strided_slice %61 {offsets = [0, 8], sizes = [8, 8], strides = [1, 1]} : vector<8x32xf32> to vector<8x8xf32>
    %70 = vector.extract_strided_slice %62 {offsets = [0, 8], sizes = [8, 8], strides = [1, 1]} : vector<8x32xf32> to vector<8x8xf32>
    %cst_29 = arith.constant dense<0.000000e+00> : vector<8x8xf32>
    %71 = tpu.matmul %69, %70, %cst_29 {dimension_numbers = #tpu.dot_dimension_numbers<[1], [1], [0], [0], [0, 0, 1, 0], [], []>} : vector<8x8xf32>, vector<8x8xf32>, vector<8x8xf32> -> vector<8x8xf32>
    %72 = arith.addf %71, %64 : vector<8x8xf32>
    %73 = vector.extract_strided_slice %61 {offsets = [0, 16], sizes = [8, 8], strides = [1, 1]} : vector<8x32xf32> to vector<8x8xf32>
    %74 = vector.extract_strided_slice %62 {offsets = [0, 16], sizes = [8, 8], strides = [1, 1]} : vector<8x32xf32> to vector<8x8xf32>
    %cst_30 = arith.constant dense<0.000000e+00> : vector<8x8xf32>
    %75 = tpu.matmul %73, %74, %cst_30 {dimension_numbers = #tpu.dot_dimension_numbers<[1], [1], [0], [0], [0, 0, 1, 0], [], []>} : vector<8x8xf32>, vector<8x8xf32>, vector<8x8xf32> -> vector<8x8xf32>
    %76 = arith.addf %75, %64 : vector<8x8xf32>
    %77 = vector.extract_strided_slice %61 {offsets = [0, 24], sizes = [8, 8], strides = [1, 1]} : vector<8x32xf32> to vector<8x8xf32>
    %78 = vector.extract_strided_slice %62 {offsets = [0, 24], sizes = [8, 8], strides = [1, 1]} : vector<8x32xf32> to vector<8x8xf32>
    %cst_31 = arith.constant dense<0.000000e+00> : vector<8x8xf32>
    %79 = tpu.matmul %77, %78, %cst_31 {dimension_numbers = #tpu.dot_dimension_numbers<[1], [1], [0], [0], [0, 0, 1, 0], [], []>} : vector<8x8xf32>, vector<8x8xf32>, vector<8x8xf32> -> vector<8x8xf32>
    %80 = arith.addf %79, %64 : vector<8x8xf32>
    %81 = tpu.concatenate %48, %52, %56, %60, %68, %72, %76, %80 in 0 : vector<8x8xf32>, vector<8x8xf32>, vector<8x8xf32>, vector<8x8xf32>, vector<8x8xf32>, vector<8x8xf32>, vector<8x8xf32>, vector<8x8xf32> -> vector<64x8xf32>
    %cst_32 = arith.constant dense<0xFF800000> : vector<64xf32>
    %82 = vector.multi_reduction <maximumf>, %81, %cst_32 [1] : vector<64x8xf32> to vector<64xf32>
    %83 = vector.shape_cast %82 : vector<64xf32> to vector<64x1xf32>
    %84 = vector.broadcast %83 : vector<64x1xf32> to vector<64x8xf32>
    %85 = arith.subf %81, %84 : vector<64x8xf32>
    %86 = math.exp %85 : vector<64x8xf32>
    %cst_33 = arith.constant dense<0.000000e+00> : vector<64xf32>
    %87 = vector.multi_reduction <add>, %86, %cst_33 [1] : vector<64x8xf32> to vector<64xf32>
    %88 = vector.shape_cast %87 : vector<64xf32> to vector<64x1xf32>
    %89 = tpu.reciprocal %88 {approx = true} : vector<64x1xf32> -> vector<64x1xf32>
    %90 = vector.broadcast %89 : vector<64x1xf32> to vector<64x8xf32>
    %91 = arith.mulf %86, %90 : vector<64x8xf32>
    %92 = vector.extract_strided_slice %40 {offsets = [0, 0], sizes = [8, 32], strides = [1, 1]} : vector<16x32xf32> to vector<8x32xf32>
    %93 = vector.extract_strided_slice %91 {offsets = [0, 0], sizes = [8, 8], strides = [1, 1]} : vector<64x8xf32> to vector<8x8xf32>
    %94 = vector.extract_strided_slice %92 {offsets = [0, 0], sizes = [8, 8], strides = [1, 1]} : vector<8x32xf32> to vector<8x8xf32>
    %cst_34 = arith.constant dense<0.000000e+00> : vector<8x8xf32>
    %95 = tpu.matmul %93, %94, %cst_34 {dimension_numbers = #tpu.dot_dimension_numbers<[1], [0], [0], [1], [0, 0, 1, 1], [], []>} : vector<8x8xf32>, vector<8x8xf32>, vector<8x8xf32> -> vector<8x8xf32>
    %96 = vector.extract_strided_slice %91 {offsets = [8, 0], sizes = [8, 8], strides = [1, 1]} : vector<64x8xf32> to vector<8x8xf32>
    %97 = vector.extract_strided_slice %92 {offsets = [0, 8], sizes = [8, 8], strides = [1, 1]} : vector<8x32xf32> to vector<8x8xf32>
    %cst_35 = arith.constant dense<0.000000e+00> : vector<8x8xf32>
    %98 = tpu.matmul %96, %97, %cst_35 {dimension_numbers = #tpu.dot_dimension_numbers<[1], [0], [0], [1], [0, 0, 1, 1], [], []>} : vector<8x8xf32>, vector<8x8xf32>, vector<8x8xf32> -> vector<8x8xf32>
    %99 = vector.extract_strided_slice %91 {offsets = [16, 0], sizes = [8, 8], strides = [1, 1]} : vector<64x8xf32> to vector<8x8xf32>
    %100 = vector.extract_strided_slice %92 {offsets = [0, 16], sizes = [8, 8], strides = [1, 1]} : vector<8x32xf32> to vector<8x8xf32>
    %cst_36 = arith.constant dense<0.000000e+00> : vector<8x8xf32>
    %101 = tpu.matmul %99, %100, %cst_36 {dimension_numbers = #tpu.dot_dimension_numbers<[1], [0], [0], [1], [0, 0, 1, 1], [], []>} : vector<8x8xf32>, vector<8x8xf32>, vector<8x8xf32> -> vector<8x8xf32>
    %102 = vector.extract_strided_slice %91 {offsets = [24, 0], sizes = [8, 8], strides = [1, 1]} : vector<64x8xf32> to vector<8x8xf32>
    %103 = vector.extract_strided_slice %92 {offsets = [0, 24], sizes = [8, 8], strides = [1, 1]} : vector<8x32xf32> to vector<8x8xf32>
    %cst_37 = arith.constant dense<0.000000e+00> : vector<8x8xf32>
    %104 = tpu.matmul %102, %103, %cst_37 {dimension_numbers = #tpu.dot_dimension_numbers<[1], [0], [0], [1], [0, 0, 1, 1], [], []>} : vector<8x8xf32>, vector<8x8xf32>, vector<8x8xf32> -> vector<8x8xf32>
    %105 = tpu.concatenate %95, %98, %101, %104 in 1 : vector<8x8xf32>, vector<8x8xf32>, vector<8x8xf32>, vector<8x8xf32> -> vector<8x32xf32>
    %106 = vector.extract_strided_slice %40 {offsets = [8, 0], sizes = [8, 32], strides = [1, 1]} : vector<16x32xf32> to vector<8x32xf32>
    %107 = vector.extract_strided_slice %91 {offsets = [32, 0], sizes = [8, 8], strides = [1, 1]} : vector<64x8xf32> to vector<8x8xf32>
    %108 = vector.extract_strided_slice %106 {offsets = [0, 0], sizes = [8, 8], strides = [1, 1]} : vector<8x32xf32> to vector<8x8xf32>
    %cst_38 = arith.constant dense<0.000000e+00> : vector<8x8xf32>
    %109 = tpu.matmul %107, %108, %cst_38 {dimension_numbers = #tpu.dot_dimension_numbers<[1], [0], [0], [1], [0, 0, 1, 1], [], []>} : vector<8x8xf32>, vector<8x8xf32>, vector<8x8xf32> -> vector<8x8xf32>
    %110 = vector.extract_strided_slice %91 {offsets = [40, 0], sizes = [8, 8], strides = [1, 1]} : vector<64x8xf32> to vector<8x8xf32>
    %111 = vector.extract_strided_slice %106 {offsets = [0, 8], sizes = [8, 8], strides = [1, 1]} : vector<8x32xf32> to vector<8x8xf32>
    %cst_39 = arith.constant dense<0.000000e+00> : vector<8x8xf32>
    %112 = tpu.matmul %110, %111, %cst_39 {dimension_numbers = #tpu.dot_dimension_numbers<[1], [0], [0], [1], [0, 0, 1, 1], [], []>} : vector<8x8xf32>, vector<8x8xf32>, vector<8x8xf32> -> vector<8x8xf32>
    %113 = vector.extract_strided_slice %91 {offsets = [48, 0], sizes = [8, 8], strides = [1, 1]} : vector<64x8xf32> to vector<8x8xf32>
    %114 = vector.extract_strided_slice %106 {offsets = [0, 16], sizes = [8, 8], strides = [1, 1]} : vector<8x32xf32> to vector<8x8xf32>
    %cst_40 = arith.constant dense<0.000000e+00> : vector<8x8xf32>
    %115 = tpu.matmul %113, %114, %cst_40 {dimension_numbers = #tpu.dot_dimension_numbers<[1], [0], [0], [1], [0, 0, 1, 1], [], []>} : vector<8x8xf32>, vector<8x8xf32>, vector<8x8xf32> -> vector<8x8xf32>
    %116 = vector.extract_strided_slice %91 {offsets = [56, 0], sizes = [8, 8], strides = [1, 1]} : vector<64x8xf32> to vector<8x8xf32>
    %117 = vector.extract_strided_slice %106 {offsets = [0, 24], sizes = [8, 8], strides = [1, 1]} : vector<8x32xf32> to vector<8x8xf32>
    %cst_41 = arith.constant dense<0.000000e+00> : vector<8x8xf32>
    %118 = tpu.matmul %116, %117, %cst_41 {dimension_numbers = #tpu.dot_dimension_numbers<[1], [0], [0], [1], [0, 0, 1, 1], [], []>} : vector<8x8xf32>, vector<8x8xf32>, vector<8x8xf32> -> vector<8x8xf32>
    %119 = tpu.concatenate %109, %112, %115, %118 in 1 : vector<8x8xf32>, vector<8x8xf32>, vector<8x8xf32>, vector<8x8xf32> -> vector<8x32xf32>
    %120 = tpu.concatenate %105, %119 in 0 : vector<8x32xf32>, vector<8x32xf32> -> vector<16x32xf32>
    %c0_42 = arith.constant 0 : index
    %c0_43 = arith.constant 0 : index
    %121 = vector.load %arg8[%c0_42, %c0_43] : memref<32x32xf32, #tpu.memory_space<vmem>>, vector<32x32xf32>
    %cst_44 = arith.constant dense<0.000000e+00> : vector<16x32xf32>
    %122 = tpu.matmul %120, %121, %cst_44 {dimension_numbers = #tpu.dot_dimension_numbers<[1], [0], [0], [1], [0, 0, 1, 1], [], []>} : vector<16x32xf32>, vector<32x32xf32>, vector<16x32xf32> -> vector<16x32xf32>
    %123 = arith.addf %0, %122 : vector<16x32xf32>
    %c0_45 = arith.constant 0 : index
    %c0_46 = arith.constant 0 : index
    %124 = vector.load %arg9[%c0_45, %c0_46] : memref<1x32xf32, #tpu.memory_space<vmem>>, vector<1x32xf32>
    %125 = vector.broadcast %124 : vector<1x32xf32> to vector<16x32xf32>
    %126 = arith.addf %123, %125 : vector<16x32xf32>
    %c1 = arith.constant 1 : index
    %c0_47 = arith.constant 0 : index
    %127 = vector.load %arg4[%c1, %c0_47] : memref<3x32xf32, #tpu.memory_space<vmem>>, vector<1x32xf32>
    %c1_48 = arith.constant 1 : index
    %c0_49 = arith.constant 0 : index
    %128 = vector.load %arg5[%c1_48, %c0_49] : memref<3x32xf32, #tpu.memory_space<vmem>>, vector<1x32xf32>
    %cst_50 = arith.constant dense<0.000000e+00> : vector<16xf32>
    %129 = vector.multi_reduction <add>, %126, %cst_50 [1] : vector<16x32xf32> to vector<16xf32>
    %130 = vector.shape_cast %129 : vector<16xf32> to vector<16x1xf32>
    %cst_51 = arith.constant 3.200000e+01 : f32
    %131 = vector.broadcast %cst_51 : f32 to vector<16x1xf32>
    %132 = arith.divf %130, %131 : vector<16x1xf32>
    %133 = vector.broadcast %132 : vector<16x1xf32> to vector<16x32xf32>
    %134 = arith.subf %126, %133 : vector<16x32xf32>
    %135 = arith.mulf %134, %134 : vector<16x32xf32>
    %cst_52 = arith.constant dense<0.000000e+00> : vector<16xf32>
    %136 = vector.multi_reduction <add>, %135, %cst_52 [1] : vector<16x32xf32> to vector<16xf32>
    %137 = vector.shape_cast %136 : vector<16xf32> to vector<16x1xf32>
    %cst_53 = arith.constant 3.100000e+01 : f32
    %138 = vector.broadcast %cst_53 : f32 to vector<16x1xf32>
    %139 = arith.divf %137, %138 : vector<16x1xf32>
    %140 = math.sqrt %139 : vector<16x1xf32>
    %cst_54 = arith.constant 9.99999997E-7 : f32
    %141 = vector.broadcast %cst_54 : f32 to vector<16x1xf32>
    %142 = arith.addf %140, %141 : vector<16x1xf32>
    %143 = tpu.reciprocal %142 {approx = true} : vector<16x1xf32> -> vector<16x1xf32>
    %144 = vector.broadcast %132 : vector<16x1xf32> to vector<16x32xf32>
    %145 = arith.subf %126, %144 : vector<16x32xf32>
    %146 = vector.broadcast %127 : vector<1x32xf32> to vector<16x32xf32>
    %147 = arith.mulf %146, %145 : vector<16x32xf32>
    %148 = vector.broadcast %143 : vector<16x1xf32> to vector<16x32xf32>
    %149 = arith.mulf %147, %148 : vector<16x32xf32>
    %150 = vector.broadcast %128 : vector<1x32xf32> to vector<16x32xf32>
    %151 = arith.addf %149, %150 : vector<16x32xf32>
    %c0_55 = arith.constant 0 : index
    %c0_56 = arith.constant 0 : index
    %152 = vector.load %arg10[%c0_55, %c0_56] : memref<32x32xf32, #tpu.memory_space<vmem>>, vector<32x32xf32>
    %cst_57 = arith.constant dense<0.000000e+00> : vector<16x32xf32>
    %153 = tpu.matmul %151, %152, %cst_57 {dimension_numbers = #tpu.dot_dimension_numbers<[1], [0], [0], [1], [0, 0, 1, 1], [], []>} : vector<16x32xf32>, vector<32x32xf32>, vector<16x32xf32> -> vector<16x32xf32>
    %c0_58 = arith.constant 0 : index
    %c0_59 = arith.constant 0 : index
    %154 = vector.load %arg11[%c0_58, %c0_59] : memref<1x32xf32, #tpu.memory_space<vmem>>, vector<1x32xf32>
    %155 = vector.broadcast %154 : vector<1x32xf32> to vector<16x32xf32>
    %156 = arith.addf %153, %155 : vector<16x32xf32>
    %157 = vector.broadcast %5 : f32 to vector<16x32xf32>
    %158 = arith.mulf %156, %157 : vector<16x32xf32>
    %c0_60 = arith.constant 0 : index
    %c0_61 = arith.constant 0 : index
    %159 = vector.load %arg12[%c0_60, %c0_61] : memref<32x64xf32, #tpu.memory_space<vmem>>, vector<32x64xf32>
    %cst_62 = arith.constant dense<0.000000e+00> : vector<16x64xf32>
    %160 = tpu.matmul %1, %159, %cst_62 {dimension_numbers = #tpu.dot_dimension_numbers<[1], [0], [0], [1], [0, 0, 1, 1], [], []>} : vector<16x32xf32>, vector<32x64xf32>, vector<16x64xf32> -> vector<16x64xf32>
    %c0_63 = arith.constant 0 : index
    %c0_64 = arith.constant 0 : index
    %161 = vector.load %arg13[%c0_63, %c0_64] : memref<1x64xf32, #tpu.memory_space<vmem>>, vector<1x64xf32>
    %162 = vector.broadcast %161 : vector<1x64xf32> to vector<16x64xf32>
    %163 = arith.addf %160, %162 : vector<16x64xf32>
    %164 = vector.extract_strided_slice %163 {offsets = [0, 0], sizes = [16, 32], strides = [1, 1]} : vector<16x64xf32> to vector<16x32xf32>
    %165 = vector.extract_strided_slice %163 {offsets = [0, 32], sizes = [16, 32], strides = [1, 1]} : vector<16x64xf32> to vector<16x32xf32>
    %166 = vector.extract_strided_slice %158 {offsets = [0, 0], sizes = [8, 32], strides = [1, 1]} : vector<16x32xf32> to vector<8x32xf32>
    %167 = vector.extract_strided_slice %164 {offsets = [0, 0], sizes = [8, 32], strides = [1, 1]} : vector<16x32xf32> to vector<8x32xf32>
    %168 = vector.extract_strided_slice %3 {offsets = [0, 0, 0], sizes = [1, 1, 8], strides = [1, 1, 1]} : vector<2x1x8xf32> to vector<1x1x8xf32>
    %169 = vector.shape_cast %168 : vector<1x1x8xf32> to vector<1x8xf32>
    %170 = vector.extract_strided_slice %166 {offsets = [0, 0], sizes = [8, 8], strides = [1, 1]} : vector<8x32xf32> to vector<8x8xf32>
    %171 = vector.extract_strided_slice %167 {offsets = [0, 0], sizes = [8, 8], strides = [1, 1]} : vector<8x32xf32> to vector<8x8xf32>
    %cst_65 = arith.constant dense<0.000000e+00> : vector<8x8xf32>
    %172 = tpu.matmul %170, %171, %cst_65 {dimension_numbers = #tpu.dot_dimension_numbers<[1], [1], [0], [0], [0, 0, 1, 0], [], []>} : vector<8x8xf32>, vector<8x8xf32>, vector<8x8xf32> -> vector<8x8xf32>
    %173 = vector.broadcast %169 : vector<1x8xf32> to vector<8x8xf32>
    %174 = arith.addf %172, %173 : vector<8x8xf32>
    %175 = vector.extract_strided_slice %166 {offsets = [0, 8], sizes = [8, 8], strides = [1, 1]} : vector<8x32xf32> to vector<8x8xf32>
    %176 = vector.extract_strided_slice %167 {offsets = [0, 8], sizes = [8, 8], strides = [1, 1]} : vector<8x32xf32> to vector<8x8xf32>
    %cst_66 = arith.constant dense<0.000000e+00> : vector<8x8xf32>
    %177 = tpu.matmul %175, %176, %cst_66 {dimension_numbers = #tpu.dot_dimension_numbers<[1], [1], [0], [0], [0, 0, 1, 0], [], []>} : vector<8x8xf32>, vector<8x8xf32>, vector<8x8xf32> -> vector<8x8xf32>
    %178 = vector.broadcast %169 : vector<1x8xf32> to vector<8x8xf32>
    %179 = arith.addf %177, %178 : vector<8x8xf32>
    %180 = vector.extract_strided_slice %166 {offsets = [0, 16], sizes = [8, 8], strides = [1, 1]} : vector<8x32xf32> to vector<8x8xf32>
    %181 = vector.extract_strided_slice %167 {offsets = [0, 16], sizes = [8, 8], strides = [1, 1]} : vector<8x32xf32> to vector<8x8xf32>
    %cst_67 = arith.constant dense<0.000000e+00> : vector<8x8xf32>
    %182 = tpu.matmul %180, %181, %cst_67 {dimension_numbers = #tpu.dot_dimension_numbers<[1], [1], [0], [0], [0, 0, 1, 0], [], []>} : vector<8x8xf32>, vector<8x8xf32>, vector<8x8xf32> -> vector<8x8xf32>
    %183 = vector.broadcast %169 : vector<1x8xf32> to vector<8x8xf32>
    %184 = arith.addf %182, %183 : vector<8x8xf32>
    %185 = vector.extract_strided_slice %166 {offsets = [0, 24], sizes = [8, 8], strides = [1, 1]} : vector<8x32xf32> to vector<8x8xf32>
    %186 = vector.extract_strided_slice %167 {offsets = [0, 24], sizes = [8, 8], strides = [1, 1]} : vector<8x32xf32> to vector<8x8xf32>
    %cst_68 = arith.constant dense<0.000000e+00> : vector<8x8xf32>
    %187 = tpu.matmul %185, %186, %cst_68 {dimension_numbers = #tpu.dot_dimension_numbers<[1], [1], [0], [0], [0, 0, 1, 0], [], []>} : vector<8x8xf32>, vector<8x8xf32>, vector<8x8xf32> -> vector<8x8xf32>
    %188 = vector.broadcast %169 : vector<1x8xf32> to vector<8x8xf32>
    %189 = arith.addf %187, %188 : vector<8x8xf32>
    %190 = vector.extract_strided_slice %158 {offsets = [8, 0], sizes = [8, 32], strides = [1, 1]} : vector<16x32xf32> to vector<8x32xf32>
    %191 = vector.extract_strided_slice %164 {offsets = [8, 0], sizes = [8, 32], strides = [1, 1]} : vector<16x32xf32> to vector<8x32xf32>
    %192 = vector.extract_strided_slice %3 {offsets = [1, 0, 0], sizes = [1, 1, 8], strides = [1, 1, 1]} : vector<2x1x8xf32> to vector<1x1x8xf32>
    %193 = vector.shape_cast %192 : vector<1x1x8xf32> to vector<1x8xf32>
    %194 = vector.extract_strided_slice %190 {offsets = [0, 0], sizes = [8, 8], strides = [1, 1]} : vector<8x32xf32> to vector<8x8xf32>
    %195 = vector.extract_strided_slice %191 {offsets = [0, 0], sizes = [8, 8], strides = [1, 1]} : vector<8x32xf32> to vector<8x8xf32>
    %cst_69 = arith.constant dense<0.000000e+00> : vector<8x8xf32>
    %196 = tpu.matmul %194, %195, %cst_69 {dimension_numbers = #tpu.dot_dimension_numbers<[1], [1], [0], [0], [0, 0, 1, 0], [], []>} : vector<8x8xf32>, vector<8x8xf32>, vector<8x8xf32> -> vector<8x8xf32>
    %197 = vector.broadcast %193 : vector<1x8xf32> to vector<8x8xf32>
    %198 = arith.addf %196, %197 : vector<8x8xf32>
    %199 = vector.extract_strided_slice %190 {offsets = [0, 8], sizes = [8, 8], strides = [1, 1]} : vector<8x32xf32> to vector<8x8xf32>
    %200 = vector.extract_strided_slice %191 {offsets = [0, 8], sizes = [8, 8], strides = [1, 1]} : vector<8x32xf32> to vector<8x8xf32>
    %cst_70 = arith.constant dense<0.000000e+00> : vector<8x8xf32>
    %201 = tpu.matmul %199, %200, %cst_70 {dimension_numbers = #tpu.dot_dimension_numbers<[1], [1], [0], [0], [0, 0, 1, 0], [], []>} : vector<8x8xf32>, vector<8x8xf32>, vector<8x8xf32> -> vector<8x8xf32>
    %202 = vector.broadcast %193 : vector<1x8xf32> to vector<8x8xf32>
    %203 = arith.addf %201, %202 : vector<8x8xf32>
    %204 = vector.extract_strided_slice %190 {offsets = [0, 16], sizes = [8, 8], strides = [1, 1]} : vector<8x32xf32> to vector<8x8xf32>
    %205 = vector.extract_strided_slice %191 {offsets = [0, 16], sizes = [8, 8], strides = [1, 1]} : vector<8x32xf32> to vector<8x8xf32>
    %cst_71 = arith.constant dense<0.000000e+00> : vector<8x8xf32>
    %206 = tpu.matmul %204, %205, %cst_71 {dimension_numbers = #tpu.dot_dimension_numbers<[1], [1], [0], [0], [0, 0, 1, 0], [], []>} : vector<8x8xf32>, vector<8x8xf32>, vector<8x8xf32> -> vector<8x8xf32>
    %207 = vector.broadcast %193 : vector<1x8xf32> to vector<8x8xf32>
    %208 = arith.addf %206, %207 : vector<8x8xf32>
    %209 = vector.extract_strided_slice %190 {offsets = [0, 24], sizes = [8, 8], strides = [1, 1]} : vector<8x32xf32> to vector<8x8xf32>
    %210 = vector.extract_strided_slice %191 {offsets = [0, 24], sizes = [8, 8], strides = [1, 1]} : vector<8x32xf32> to vector<8x8xf32>
    %cst_72 = arith.constant dense<0.000000e+00> : vector<8x8xf32>
    %211 = tpu.matmul %209, %210, %cst_72 {dimension_numbers = #tpu.dot_dimension_numbers<[1], [1], [0], [0], [0, 0, 1, 0], [], []>} : vector<8x8xf32>, vector<8x8xf32>, vector<8x8xf32> -> vector<8x8xf32>
    %212 = vector.broadcast %193 : vector<1x8xf32> to vector<8x8xf32>
    %213 = arith.addf %211, %212 : vector<8x8xf32>
    %214 = tpu.concatenate %174, %179, %184, %189, %198, %203, %208, %213 in 0 : vector<8x8xf32>, vector<8x8xf32>, vector<8x8xf32>, vector<8x8xf32>, vector<8x8xf32>, vector<8x8xf32>, vector<8x8xf32>, vector<8x8xf32> -> vector<64x8xf32>
    %cst_73 = arith.constant dense<0xFF800000> : vector<64xf32>
    %215 = vector.multi_reduction <maximumf>, %214, %cst_73 [1] : vector<64x8xf32> to vector<64xf32>
    %216 = vector.shape_cast %215 : vector<64xf32> to vector<64x1xf32>
    %217 = vector.broadcast %216 : vector<64x1xf32> to vector<64x8xf32>
    %218 = arith.subf %214, %217 : vector<64x8xf32>
    %219 = math.exp %218 : vector<64x8xf32>
    %cst_74 = arith.constant dense<0.000000e+00> : vector<64xf32>
    %220 = vector.multi_reduction <add>, %219, %cst_74 [1] : vector<64x8xf32> to vector<64xf32>
    %221 = vector.shape_cast %220 : vector<64xf32> to vector<64x1xf32>
    %222 = tpu.reciprocal %221 {approx = true} : vector<64x1xf32> -> vector<64x1xf32>
    %223 = vector.broadcast %222 : vector<64x1xf32> to vector<64x8xf32>
    %224 = arith.mulf %219, %223 : vector<64x8xf32>
    %225 = vector.extract_strided_slice %165 {offsets = [0, 0], sizes = [8, 32], strides = [1, 1]} : vector<16x32xf32> to vector<8x32xf32>
    %226 = vector.extract_strided_slice %224 {offsets = [0, 0], sizes = [8, 8], strides = [1, 1]} : vector<64x8xf32> to vector<8x8xf32>
    %227 = vector.extract_strided_slice %225 {offsets = [0, 0], sizes = [8, 8], strides = [1, 1]} : vector<8x32xf32> to vector<8x8xf32>
    %cst_75 = arith.constant dense<0.000000e+00> : vector<8x8xf32>
    %228 = tpu.matmul %226, %227, %cst_75 {dimension_numbers = #tpu.dot_dimension_numbers<[1], [0], [0], [1], [0, 0, 1, 1], [], []>} : vector<8x8xf32>, vector<8x8xf32>, vector<8x8xf32> -> vector<8x8xf32>
    %229 = vector.extract_strided_slice %224 {offsets = [8, 0], sizes = [8, 8], strides = [1, 1]} : vector<64x8xf32> to vector<8x8xf32>
    %230 = vector.extract_strided_slice %225 {offsets = [0, 8], sizes = [8, 8], strides = [1, 1]} : vector<8x32xf32> to vector<8x8xf32>
    %cst_76 = arith.constant dense<0.000000e+00> : vector<8x8xf32>
    %231 = tpu.matmul %229, %230, %cst_76 {dimension_numbers = #tpu.dot_dimension_numbers<[1], [0], [0], [1], [0, 0, 1, 1], [], []>} : vector<8x8xf32>, vector<8x8xf32>, vector<8x8xf32> -> vector<8x8xf32>
    %232 = vector.extract_strided_slice %224 {offsets = [16, 0], sizes = [8, 8], strides = [1, 1]} : vector<64x8xf32> to vector<8x8xf32>
    %233 = vector.extract_strided_slice %225 {offsets = [0, 16], sizes = [8, 8], strides = [1, 1]} : vector<8x32xf32> to vector<8x8xf32>
    %cst_77 = arith.constant dense<0.000000e+00> : vector<8x8xf32>
    %234 = tpu.matmul %232, %233, %cst_77 {dimension_numbers = #tpu.dot_dimension_numbers<[1], [0], [0], [1], [0, 0, 1, 1], [], []>} : vector<8x8xf32>, vector<8x8xf32>, vector<8x8xf32> -> vector<8x8xf32>
    %235 = vector.extract_strided_slice %224 {offsets = [24, 0], sizes = [8, 8], strides = [1, 1]} : vector<64x8xf32> to vector<8x8xf32>
    %236 = vector.extract_strided_slice %225 {offsets = [0, 24], sizes = [8, 8], strides = [1, 1]} : vector<8x32xf32> to vector<8x8xf32>
    %cst_78 = arith.constant dense<0.000000e+00> : vector<8x8xf32>
    %237 = tpu.matmul %235, %236, %cst_78 {dimension_numbers = #tpu.dot_dimension_numbers<[1], [0], [0], [1], [0, 0, 1, 1], [], []>} : vector<8x8xf32>, vector<8x8xf32>, vector<8x8xf32> -> vector<8x8xf32>
    %238 = tpu.concatenate %228, %231, %234, %237 in 1 : vector<8x8xf32>, vector<8x8xf32>, vector<8x8xf32>, vector<8x8xf32> -> vector<8x32xf32>
    %239 = vector.extract_strided_slice %165 {offsets = [8, 0], sizes = [8, 32], strides = [1, 1]} : vector<16x32xf32> to vector<8x32xf32>
    %240 = vector.extract_strided_slice %224 {offsets = [32, 0], sizes = [8, 8], strides = [1, 1]} : vector<64x8xf32> to vector<8x8xf32>
    %241 = vector.extract_strided_slice %239 {offsets = [0, 0], sizes = [8, 8], strides = [1, 1]} : vector<8x32xf32> to vector<8x8xf32>
    %cst_79 = arith.constant dense<0.000000e+00> : vector<8x8xf32>
    %242 = tpu.matmul %240, %241, %cst_79 {dimension_numbers = #tpu.dot_dimension_numbers<[1], [0], [0], [1], [0, 0, 1, 1], [], []>} : vector<8x8xf32>, vector<8x8xf32>, vector<8x8xf32> -> vector<8x8xf32>
    %243 = vector.extract_strided_slice %224 {offsets = [40, 0], sizes = [8, 8], strides = [1, 1]} : vector<64x8xf32> to vector<8x8xf32>
    %244 = vector.extract_strided_slice %239 {offsets = [0, 8], sizes = [8, 8], strides = [1, 1]} : vector<8x32xf32> to vector<8x8xf32>
    %cst_80 = arith.constant dense<0.000000e+00> : vector<8x8xf32>
    %245 = tpu.matmul %243, %244, %cst_80 {dimension_numbers = #tpu.dot_dimension_numbers<[1], [0], [0], [1], [0, 0, 1, 1], [], []>} : vector<8x8xf32>, vector<8x8xf32>, vector<8x8xf32> -> vector<8x8xf32>
    %246 = vector.extract_strided_slice %224 {offsets = [48, 0], sizes = [8, 8], strides = [1, 1]} : vector<64x8xf32> to vector<8x8xf32>
    %247 = vector.extract_strided_slice %239 {offsets = [0, 16], sizes = [8, 8], strides = [1, 1]} : vector<8x32xf32> to vector<8x8xf32>
    %cst_81 = arith.constant dense<0.000000e+00> : vector<8x8xf32>
    %248 = tpu.matmul %246, %247, %cst_81 {dimension_numbers = #tpu.dot_dimension_numbers<[1], [0], [0], [1], [0, 0, 1, 1], [], []>} : vector<8x8xf32>, vector<8x8xf32>, vector<8x8xf32> -> vector<8x8xf32>
    %249 = vector.extract_strided_slice %224 {offsets = [56, 0], sizes = [8, 8], strides = [1, 1]} : vector<64x8xf32> to vector<8x8xf32>
    %250 = vector.extract_strided_slice %239 {offsets = [0, 24], sizes = [8, 8], strides = [1, 1]} : vector<8x32xf32> to vector<8x8xf32>
    %cst_82 = arith.constant dense<0.000000e+00> : vector<8x8xf32>
    %251 = tpu.matmul %249, %250, %cst_82 {dimension_numbers = #tpu.dot_dimension_numbers<[1], [0], [0], [1], [0, 0, 1, 1], [], []>} : vector<8x8xf32>, vector<8x8xf32>, vector<8x8xf32> -> vector<8x8xf32>
    %252 = tpu.concatenate %242, %245, %248, %251 in 1 : vector<8x8xf32>, vector<8x8xf32>, vector<8x8xf32>, vector<8x8xf32> -> vector<8x32xf32>
    %253 = tpu.concatenate %238, %252 in 0 : vector<8x32xf32>, vector<8x32xf32> -> vector<16x32xf32>
    %c0_83 = arith.constant 0 : index
    %c0_84 = arith.constant 0 : index
    %254 = vector.load %arg14[%c0_83, %c0_84] : memref<32x32xf32, #tpu.memory_space<vmem>>, vector<32x32xf32>
    %cst_85 = arith.constant dense<0.000000e+00> : vector<16x32xf32>
    %255 = tpu.matmul %253, %254, %cst_85 {dimension_numbers = #tpu.dot_dimension_numbers<[1], [0], [0], [1], [0, 0, 1, 1], [], []>} : vector<16x32xf32>, vector<32x32xf32>, vector<16x32xf32> -> vector<16x32xf32>
    %256 = arith.addf %126, %255 : vector<16x32xf32>
    %c0_86 = arith.constant 0 : index
    %c0_87 = arith.constant 0 : index
    %257 = vector.load %arg15[%c0_86, %c0_87] : memref<1x32xf32, #tpu.memory_space<vmem>>, vector<1x32xf32>
    %258 = vector.broadcast %257 : vector<1x32xf32> to vector<16x32xf32>
    %259 = arith.addf %256, %258 : vector<16x32xf32>
    %c2 = arith.constant 2 : index
    %c0_88 = arith.constant 0 : index
    %260 = vector.load %arg4[%c2, %c0_88] : memref<3x32xf32, #tpu.memory_space<vmem>>, vector<1x32xf32>
    %c2_89 = arith.constant 2 : index
    %c0_90 = arith.constant 0 : index
    %261 = vector.load %arg5[%c2_89, %c0_90] : memref<3x32xf32, #tpu.memory_space<vmem>>, vector<1x32xf32>
    %cst_91 = arith.constant dense<0.000000e+00> : vector<16xf32>
    %262 = vector.multi_reduction <add>, %259, %cst_91 [1] : vector<16x32xf32> to vector<16xf32>
    %263 = vector.shape_cast %262 : vector<16xf32> to vector<16x1xf32>
    %cst_92 = arith.constant 3.200000e+01 : f32
    %264 = vector.broadcast %cst_92 : f32 to vector<16x1xf32>
    %265 = arith.divf %263, %264 : vector<16x1xf32>
    %266 = vector.broadcast %265 : vector<16x1xf32> to vector<16x32xf32>
    %267 = arith.subf %259, %266 : vector<16x32xf32>
    %268 = arith.mulf %267, %267 : vector<16x32xf32>
    %cst_93 = arith.constant dense<0.000000e+00> : vector<16xf32>
    %269 = vector.multi_reduction <add>, %268, %cst_93 [1] : vector<16x32xf32> to vector<16xf32>
    %270 = vector.shape_cast %269 : vector<16xf32> to vector<16x1xf32>
    %cst_94 = arith.constant 3.100000e+01 : f32
    %271 = vector.broadcast %cst_94 : f32 to vector<16x1xf32>
    %272 = arith.divf %270, %271 : vector<16x1xf32>
    %273 = math.sqrt %272 : vector<16x1xf32>
    %cst_95 = arith.constant 9.99999997E-7 : f32
    %274 = vector.broadcast %cst_95 : f32 to vector<16x1xf32>
    %275 = arith.addf %273, %274 : vector<16x1xf32>
    %276 = tpu.reciprocal %275 {approx = true} : vector<16x1xf32> -> vector<16x1xf32>
    %277 = vector.broadcast %265 : vector<16x1xf32> to vector<16x32xf32>
    %278 = arith.subf %259, %277 : vector<16x32xf32>
    %279 = vector.broadcast %260 : vector<1x32xf32> to vector<16x32xf32>
    %280 = arith.mulf %279, %278 : vector<16x32xf32>
    %281 = vector.broadcast %276 : vector<16x1xf32> to vector<16x32xf32>
    %282 = arith.mulf %280, %281 : vector<16x32xf32>
    %283 = vector.broadcast %261 : vector<1x32xf32> to vector<16x32xf32>
    %284 = arith.addf %282, %283 : vector<16x32xf32>
    %c0_96 = arith.constant 0 : index
    %c0_97 = arith.constant 0 : index
    %285 = vector.load %arg16[%c0_96, %c0_97] : memref<32x64xf32, #tpu.memory_space<vmem>>, vector<32x64xf32>
    %cst_98 = arith.constant dense<0.000000e+00> : vector<16x64xf32>
    %286 = tpu.matmul %284, %285, %cst_98 {dimension_numbers = #tpu.dot_dimension_numbers<[1], [0], [0], [1], [0, 0, 1, 1], [], []>} : vector<16x32xf32>, vector<32x64xf32>, vector<16x64xf32> -> vector<16x64xf32>
    %c0_99 = arith.constant 0 : index
    %c0_100 = arith.constant 0 : index
    %287 = vector.load %arg17[%c0_99, %c0_100] : memref<1x64xf32, #tpu.memory_space<vmem>>, vector<1x64xf32>
    %288 = vector.broadcast %287 : vector<1x64xf32> to vector<16x64xf32>
    %289 = arith.addf %286, %288 : vector<16x64xf32>
    %cst_101 = arith.constant 0.000000e+00 : f32
    %290 = vector.broadcast %cst_101 : f32 to vector<16x64xf32>
    %291 = arith.maximumf %289, %290 : vector<16x64xf32>
    %c0_102 = arith.constant 0 : index
    %c0_103 = arith.constant 0 : index
    %292 = vector.load %arg18[%c0_102, %c0_103] : memref<64x32xf32, #tpu.memory_space<vmem>>, vector<64x32xf32>
    %cst_104 = arith.constant dense<0.000000e+00> : vector<16x32xf32>
    %293 = tpu.matmul %291, %292, %cst_104 {dimension_numbers = #tpu.dot_dimension_numbers<[1], [0], [0], [1], [0, 0, 1, 1], [], []>} : vector<16x64xf32>, vector<64x32xf32>, vector<16x32xf32> -> vector<16x32xf32>
    %c0_105 = arith.constant 0 : index
    %c0_106 = arith.constant 0 : index
    %294 = vector.load %arg19[%c0_105, %c0_106] : memref<1x32xf32, #tpu.memory_space<vmem>>, vector<1x32xf32>
    %295 = vector.broadcast %294 : vector<1x32xf32> to vector<16x32xf32>
    %296 = arith.addf %293, %295 : vector<16x32xf32>
    %297 = arith.addf %259, %296 : vector<16x32xf32>
    %c0_107 = arith.constant 0 : index
    %c0_108 = arith.constant 0 : index
    %298 = vector.load %arg20[%c0_107, %c0_108] : memref<16x32xf32, #tpu.memory_space<vmem>>, vector<16x32xf32>
    tpu.vector_store %arg20[%c0_107, %c0_108], %297 {strides = array<i32>} : memref<16x32xf32, #tpu.memory_space<vmem>>, vector<16x32xf32>,
    return
  }
}

</mosaic_0001>

<bundles_post_ra>
// kernel: tpu_custom_call.1
= control target key start
LH: loop header
LB: loop body
LE: loop exit
PB: predicated region body
PF: predicated region fallthrough
CT: control target
= control target key end

     0   :  { %s5359_s0 = inlined_call_operand.hbm [shape: f32[16,32], index: 0, kind: input, shape index: {}]   ;;  %s5360_s1 = inlined_call_operand.hbm [shape: f32[16,32], index: 1, kind: input, shape index: {}]   ;;  %s5361_s2 = inlined_call_operand.hbm [shape: f32[2,8,8], index: 2, kind: input, shape index: {}]   ;;  %s5362_s3 = inlined_call_operand.hbm [shape: f32[2,1,8], index: 3, kind: input, shape index: {}]   ;;  %s5363_s4 = inlined_call_operand.hbm [shape: f32[3,32], index: 4, kind: input, shape index: {}]   ;;  %s5364_s5 = inlined_call_operand.hbm [shape: f32[3,32], index: 5, kind: input, shape index: {}]   ;;  %s5365_s6 = inlined_call_operand.vmem [shape: f32[32,96], index: 6, kind: input, shape index: {}]   ;;  %s5366_s7 = inlined_call_operand.hbm [shape: f32[1,96], index: 7, kind: input, shape index: {}]   ;;  %s5367_s8 = inlined_call_operand.vmem [shape: f32[32,32], index: 8, kind: input, shape index: {}]   ;;  %s5368_s9 = inlined_call_operand.hbm [shape: f32[1,32], index: 9, kind: input, shape index: {}]   ;;  %s5369_s10 = inlined_call_operand.vmem [shape: f32[32,32], index: 10, kind: input, shape index: {}]   ;;  %s5370_s11 = inlined_call_operand.hbm [shape: f32[1,32], index: 11, kind: input, shape index: {}]   ;;  %s5371_s12 = inlined_call_operand.hbm [shape: f32[32,64], index: 12, kind: input, shape index: {}]   ;;  %s5372_s13 = inlined_call_operand.hbm [shape: f32[1,64], index: 13, kind: input, shape index: {}]   ;;  %s5373_s14 = inlined_call_operand.hbm [shape: f32[32,32], index: 14, kind: input, shape index: {}]   ;;  %s5374_s15 = inlined_call_operand.hbm [shape: f32[1,32], index: 15, kind: input, shape index: {}]   ;;  %s5375_s16 = inlined_call_operand.hbm [shape: f32[32,64], index: 16, kind: input, shape index: {}]   ;;  %s5376_s17 = inlined_call_operand.hbm [shape: f32[1,64], index: 17, kind: input, shape index: {}]   ;;  %s5377_s18 = inlined_call_operand.vmem [shape: f32[64,32], index: 18, kind: input, shape index: {}]   ;;  %s5378_s19 = inlined_call_operand.vmem [shape: f32[1,32], index: 19, kind: input, shape index: {}]   ;;  %s5379_s20 = inlined_call_operand.hbm [shape: f32[16,32], index: 20, kind: output, shape index: {}]  }
   0x1   :  { %5380 = sst [smem:[#allocation36_spill]] %s5359_s0 }
   0x2   :  { %5381 = sst [smem:[#allocation37_spill]] %s5360_s1 }
   0x3   :  { %5382 = sst [smem:[#allocation38_spill]] %s5361_s2 }
   0x4   :  { %5383 = sst [smem:[#allocation39_spill]] %s5362_s3 }
   0x5   :  { %5384 = sst [smem:[#allocation40_spill]] %s5363_s4 }
   0x6   :  { %5385 = sst [smem:[#allocation41_spill]] %s5379_s20 }
   0x7   :  { %25 = vsyncpa [#allocation3], 0 }
   0x8   :  { %26 = vsyncpa [#allocation6], 0 }
   0x9   :  { %27 = vsyncpa [#allocation9], 0 }
   0xa   :  { %28 = vsyncpa [#allocation12], 0 }
   0xb   :  { %29 = vsyncpa [#allocation15], 0 }
   0xc   :  { %30 = vsyncpa [#allocation18], 0 }
   0xd   :  { %31 = vsyncpa [#allocation21], 0 }
   0xe   :  { %32 = vsyncpa [#allocation24], 0 }
   0xf   :  { %33 = vsyncpa [#allocation4], 0  ;;  %s4720_s1 = smov [#allocation5]   ;;  %s4721_s23 = smov [#allocation8]  }
  0x10   :  { %s51_s22 = sshll.u32 %s4720_s1, 4  ;;  %s75_s24 = sshll.u32 %s4721_s23, 4  ;;  %s52_s22 = int_to_ptr.vmem [resolvable:$true] %s51_s22  ;;  %s76_s24 = int_to_ptr.vmem [resolvable:$true] %s75_s24 }
  0x11   :  { %s4390_s2 = scalar_lea.vmem %s52_s22, 256  ;;  %p4395_p1 = scmp.lt.s32.totalorder %s52_s22, %s52_s22 }
  0x12   :  { %p4391_p0 = scmp.ne.s32.totalorder %s52_s22, %s4390_s2  ;;  %p4396_p2 = scmp.lt.s32.totalorder %s4390_s2, %s4390_s2 }
  0x14   :  { %p4397_p3 = por %p4396_p2, %p4395_p1 }
  0x16   :  { %p4398_p4 = pnand %p4397_p3, %p4391_p0 }
  0x18   :  { %4401 = shalt.err (!%p4398_p4)
}
  0x19   :  { %s4722_s25 = smov 128   ;;  %s4723_s3 = smov 8  }
  0x1a   :  { %s5386_s28 = sld [smem:[#allocation37_spill]]  ;;  %s4410_s4 = scalar_lea.vmem %s76_s24, 32 }
  0x1b   :  { %p4411_p5 = scmp.ne.s32.totalorder %s76_s24, %s4410_s4  ;;  %p4415_p6 = scmp.lt.s32.totalorder %s76_s24, %s76_s24 }
  0x1c   :  { %p4416_p7 = scmp.lt.s32.totalorder %s4410_s4, %s4410_s4 }
  0x1e   :  { %p4417_p8 = por %p4416_p7, %p4415_p6 }
  0x20   :  { %57 = dma.hbm_to_vmem [thread:$0]  %s5386_s28, 256, %s52_s22, [#allocation6], %s4722_s25, %s4722_s25, %s4723_s3  }
  0x21   :  { %p4418_p9 = pnand %p4417_p8, %p4411_p5 }
  0x23   :  { %4421 = shalt.err (!%p4418_p9)
}
  0x24   :  { %s4724_s29 = smov 16   ;;  %s4725_s30 = smov 1  }
  0x25   :  { %s5387_s1 = sld [smem:[#allocation39_spill]]  ;;  %s4726_s23 = smov [#allocation11]  }
  0x26   :  { %s98_s2 = sshll.u32 %s4726_s23, 4  ;;  %s4727_s20 = smov [#allocation14]   ;;  %s99_s2 = int_to_ptr.vmem [resolvable:$true] %s98_s2 }
  0x27   :  { %s122_s26 = sshll.u32 %s4727_s20, 4  ;;  %s4430_s22 = scalar_lea.vmem %s99_s2, 64  ;;  %s123_s26 = int_to_ptr.vmem [resolvable:$true] %s122_s26 }
  0x28   :  { %p4431_p10 = scmp.ne.s32.totalorder %s99_s2, %s4430_s22  ;;  %p4435_p11 = scmp.lt.s32.totalorder %s99_s2, %s99_s2 }
  0x29   :  { %p4436_p12 = scmp.lt.s32.totalorder %s4430_s22, %s4430_s22 }
  0x2b   :  { %81 = dma.hbm_to_vmem [thread:$0]  %s5387_s1, 32, %s76_s24, [#allocation9], %s4724_s29, %s4724_s29, %s4725_s30  }
  0x2c   :  { %p4437_p13 = por %p4436_p12, %p4435_p11 }
  0x2e   :  { %p4438_p0 = pnand %p4437_p13, %p4431_p10 }
  0x30   :  { %4441 = shalt.err (!%p4438_p0)
}
  0x31   :  { %101 = dma.hbm_to_vmem [thread:$0]  %s5364_s5, 64, %s99_s2, [#allocation12]  }
  0x32   :  { %s4450_s4 = scalar_lea.vmem %s123_s26, 16  ;;  %s4454_s24 = scalar_lea.vmem %s123_s26, 32 }
  0x33   :  { %p4451_p1 = scmp.ne.s32.totalorder %s123_s26, %s4450_s4  ;;  %p4455_p2 = scmp.lt.s32.totalorder %s123_s26, %s123_s26 }
  0x34   :  { %p4456_p3 = scmp.lt.s32.totalorder %s4454_s24, %s4450_s4 }
  0x36   :  { %p4457_p4 = por %p4456_p3, %p4455_p2 }
  0x38   :  { %p4458_p5 = pnand %p4457_p4, %p4451_p1 }
  0x3a   :  { %4461 = shalt.err (!%p4458_p5)
}
  0x3b   :  { %125 = dma.hbm_to_vmem [thread:$0]  %s5368_s9, 16, %s123_s26, [#allocation15]  }
  0x3c   :  { %s4728_s0 = smov [#allocation17]   ;;  %s4729_s1 = smov [#allocation20]  }
  0x3d   :  { %s143_s21 = sshll.u32 %s4728_s0, 4  ;;  %s165_s23 = sshll.u32 %s4729_s1, 4  ;;  %s144_s21 = int_to_ptr.vmem [resolvable:$true] %s143_s21  ;;  %s166_s23 = int_to_ptr.vmem [resolvable:$true] %s165_s23 }
  0x3e   :  { %s4470_s22 = scalar_lea.vmem %s144_s21, 512  ;;  %p4475_p7 = scmp.lt.s32.totalorder %s144_s21, %s144_s21 }
  0x3f   :  { %p4471_p6 = scmp.ne.s32.totalorder %s144_s21, %s4470_s22  ;;  %p4476_p8 = scmp.lt.s32.totalorder %s4470_s22, %s4470_s22 }
  0x41   :  { %p4477_p9 = por %p4476_p8, %p4475_p7 }
  0x43   :  { %p4478_p10 = pnand %p4477_p9, %p4471_p6 }
  0x45   :  { %4481 = shalt.err (!%p4478_p10)
}
  0x46   :  { %149 = dma.hbm_to_vmem [thread:$0]  %s5371_s12, 512, %s144_s21, [#allocation18], %s4722_s25, %s4722_s25, %s4723_s3  }
  0x47   :  { %s4490_s9 = scalar_lea.vmem %s166_s23, 512  ;;  %p4495_p12 = scmp.lt.s32.totalorder %s166_s23, %s166_s23 }
  0x48   :  { %p4491_p11 = scmp.ne.s32.totalorder %s166_s23, %s4490_s9  ;;  %p4496_p13 = scmp.lt.s32.totalorder %s4490_s9, %s4490_s9 }
  0x4a   :  { %p4497_p0 = por %p4496_p13, %p4495_p12 }
  0x4c   :  { %p4498_p1 = pnand %p4497_p0, %p4491_p11 }
  0x4e   :  { %4501 = shalt.err (!%p4498_p1)
}
  0x4f   :  { %171 = dma.hbm_to_vmem [thread:$0]  %s5373_s14, 512, %s166_s23, [#allocation21], %s4722_s25, %s4722_s25, %s4723_s3  }
  0x50   :  { %s4730_s28 = smov [#allocation23]   ;;  %s4731_s24 = smov [#allocation2]  }
  0x51   :  { %s187_s4 = sshll.u32 %s4730_s28, 4  ;;  %s39_s20 = sshll.u32 %s4731_s24, 4  ;;  %s188_s4 = int_to_ptr.vmem [resolvable:$true] %s187_s4  ;;  %s40_s20 = int_to_ptr.vmem [resolvable:$true] %s39_s20 }
  0x52   :  { %s4510_s12 = scalar_lea.vmem %s188_s4, 512  ;;  %p4515_p3 = scmp.lt.s32.totalorder %s188_s4, %s188_s4 }
  0x53   :  { %p4511_p2 = scmp.ne.s32.totalorder %s188_s4, %s4510_s12  ;;  %p4516_p4 = scmp.lt.s32.totalorder %s4510_s12, %s4510_s12 }
  0x55   :  { %p4517_p5 = por %p4516_p4, %p4515_p3 }
  0x57   :  { %p4518_p6 = pnand %p4517_p5, %p4511_p2 }
  0x59   :  { %4521 = shalt.err (!%p4518_p6)
}
  0x5a   :  { %193 = dma.hbm_to_vmem [thread:$0]  %s5375_s16, 512, %s188_s4, [#allocation24], %s4722_s25, %s4722_s25, %s4723_s3  }
  0x5b   :  { %s4530_s14 = scalar_lea.vmem %s40_s20, 256  ;;  %p4535_p8 = scmp.lt.s32.totalorder %s40_s20, %s40_s20 }
  0x5c   :  { %p4531_p7 = scmp.ne.s32.totalorder %s40_s20, %s4530_s14  ;;  %p4536_p9 = scmp.lt.s32.totalorder %s4530_s14, %s4530_s14 }
  0x5e   :  { %p4537_p10 = por %p4536_p9, %p4535_p8 }
  0x60   :  { %p4538_p11 = pnand %p4537_p10, %p4531_p7 }
  0x62   :  { %4541 = shalt.err (!%p4538_p11)
}
  0x63   :  { %s5388_s23 = sld [smem:[#allocation36_spill]]  ;;  %s4732_s22 = smov [#allocation7]  }
  0x64   :  { %s63_s5 = sshll.u32 %s4732_s22, 4  ;;  %s4733_s2 = smov [#allocation10]   ;;  %s64_s5 = int_to_ptr.vmem [resolvable:$true] %s63_s5 }
  0x65   :  { %s88_s9 = sshll.u32 %s4733_s2, 4  ;;  %s4550_s16 = scalar_lea.vmem %s64_s5, 256  ;;  %s89_s9 = int_to_ptr.vmem [resolvable:$true] %s88_s9 }
  0x66   :  { %p4551_p12 = scmp.ne.s32.totalorder %s64_s5, %s4550_s16  ;;  %p4555_p13 = scmp.lt.s32.totalorder %s64_s5, %s64_s5 }
  0x67   :  { %p4556_p0 = scmp.lt.s32.totalorder %s4550_s16, %s4550_s16 }
  0x69   :  { %45 = dma.hbm_to_vmem [thread:$0]  %s5388_s23, 256, %s40_s20, [#allocation3], %s4722_s25, %s4722_s25, %s4723_s3  }
  0x6a   :  { %p4557_p1 = por %p4556_p0, %p4555_p13 }
  0x6c   :  { %p4558_p2 = pnand %p4557_p1, %p4551_p12 }
  0x6e   :  { %4561 = shalt.err (!%p4558_p2)
}
  0x6f   :  { %s5389_s28 = sld [smem:[#allocation38_spill]]  ;;  %s4570_s4 = scalar_lea.vmem %s89_s9, 64 }
  0x70   :  { %p4571_p3 = scmp.ne.s32.totalorder %s89_s9, %s4570_s4  ;;  %p4575_p4 = scmp.lt.s32.totalorder %s89_s9, %s89_s9 }
  0x71   :  { %p4576_p5 = scmp.lt.s32.totalorder %s4570_s4, %s4570_s4 }
  0x73   :  { %p4577_p6 = por %p4576_p5, %p4575_p4 }
  0x75   :  { %69 = dma.hbm_to_vmem [thread:$0]  %s5389_s28, 256, %s64_s5, [#allocation6], %s4722_s25, %s4722_s25, %s4723_s3  }
  0x76   :  { %p4578_p7 = pnand %p4577_p6, %p4571_p3 }
  0x78   :  { %4581 = shalt.err (!%p4578_p7)
}
  0x79   :  { %s5390_s12 = sld [smem:[#allocation40_spill]]  ;;  %s4734_s30 = smov [#allocation13]  }
  0x7a   :  { %s110_s0 = sshll.u32 %s4734_s30, 4  ;;  %s4735_s14 = smov [#allocation16]   ;;  %s111_s0 = int_to_ptr.vmem [resolvable:$true] %s110_s0 }
  0x7b   :  { %s134_s21 = sshll.u32 %s4735_s14, 4  ;;  %s4590_s1 = scalar_lea.vmem %s111_s0, 16  ;;  %s135_s21 = int_to_ptr.vmem [resolvable:$true] %s134_s21 }
  0x7c   :  { %p4591_p8 = scmp.ne.s32.totalorder %s111_s0, %s4590_s1  ;;  %s4594_s23 = scalar_lea.vmem %s111_s0, 32 }
  0x7d   :  { %p4595_p9 = scmp.lt.s32.totalorder %s111_s0, %s111_s0  ;;  %p4596_p10 = scmp.lt.s32.totalorder %s4594_s23, %s4590_s1 }
  0x7f   :  { %91 = dma.hbm_to_vmem [thread:$0]  %s5390_s12, 64, %s89_s9, [#allocation9]  }
  0x80   :  { %p4597_p11 = por %p4596_p10, %p4595_p9 }
  0x82   :  { %p4598_p12 = pnand %p4597_p11, %p4591_p8 }
  0x84   :  { %4601 = shalt.err (!%p4598_p12)
}
  0x85   :  { %113 = dma.hbm_to_vmem [thread:$0]  %s5366_s7, 16, %s111_s0, [#allocation12]  }
  0x86   :  { %s4610_s2 = scalar_lea.vmem %s135_s21, 16  ;;  %s4614_s9 = scalar_lea.vmem %s135_s21, 32 }
  0x87   :  { %p4611_p13 = scmp.ne.s32.totalorder %s135_s21, %s4610_s2  ;;  %p4615_p0 = scmp.lt.s32.totalorder %s135_s21, %s135_s21 }
  0x88   :  { %p4616_p1 = scmp.lt.s32.totalorder %s4614_s9, %s4610_s2 }
  0x8a   :  { %p4617_p2 = por %p4616_p1, %p4615_p0 }
  0x8c   :  { %p4618_p3 = pnand %p4617_p2, %p4611_p13 }
  0x8e   :  { %4621 = shalt.err (!%p4618_p3)
}
  0x8f   :  { %137 = dma.hbm_to_vmem [thread:$0]  %s5370_s11, 16, %s135_s21, [#allocation15]  }
  0x90   :  { %s4736_s27 = smov [#allocation19]   ;;  %s4737_s4 = smov [#allocation22]  }
  0x91   :  { %s156_s28 = sshll.u32 %s4736_s27, 4  ;;  %s178_s24 = sshll.u32 %s4737_s4, 4  ;;  %s157_s28 = int_to_ptr.vmem [resolvable:$true] %s156_s28  ;;  %s179_s24 = int_to_ptr.vmem [resolvable:$true] %s178_s24 }
  0x92   :  { %s4630_s20 = scalar_lea.vmem %s157_s28, 16  ;;  %s4634_s7 = scalar_lea.vmem %s157_s28, 32 }
  0x93   :  { %p4631_p4 = scmp.ne.s32.totalorder %s157_s28, %s4630_s20  ;;  %p4635_p5 = scmp.lt.s32.totalorder %s157_s28, %s157_s28 }
  0x94   :  { %p4636_p6 = scmp.lt.s32.totalorder %s4634_s7, %s4630_s20 }
  0x96   :  { %p4637_p7 = por %p4636_p6, %p4635_p5 }
  0x98   :  { %p4638_p8 = pnand %p4637_p7, %p4631_p4 }
  0x9a   :  { %4641 = shalt.err (!%p4638_p8)
}
  0x9b   :  { %159 = dma.hbm_to_vmem [thread:$0]  %s5372_s13, 16, %s157_s28, [#allocation18]  }
  0x9c   :  { %s4650_s0 = scalar_lea.vmem %s179_s24, 16  ;;  %s4654_s11 = scalar_lea.vmem %s179_s24, 32 }
  0x9d   :  { %p4651_p9 = scmp.ne.s32.totalorder %s179_s24, %s4650_s0  ;;  %p4655_p10 = scmp.lt.s32.totalorder %s179_s24, %s179_s24 }
  0x9e   :  { %p4656_p11 = scmp.lt.s32.totalorder %s4654_s11, %s4650_s0 }
  0xa0   :  { %p4657_p12 = por %p4656_p11, %p4655_p10 }
  0xa2   :  { %p4658_p13 = pnand %p4657_p12, %p4651_p9 }
  0xa4   :  { %4661 = shalt.err (!%p4658_p13)
}
  0xa5   :  { %181 = dma.hbm_to_vmem [thread:$0]  %s5374_s15, 16, %s179_s24, [#allocation21]  }
  0xa6   :  { %s4738_s1 = smov [#allocation25]  }
  0xa7   :  { %s200_s23 = sshll.u32 %s4738_s1, 4  ;;  %s201_s23 = int_to_ptr.vmem [resolvable:$true] %s200_s23 }
  0xa8   :  { %s4670_s22 = scalar_lea.vmem %s201_s23, 16  ;;  %s4674_s5 = scalar_lea.vmem %s201_s23, 32 }
  0xa9   :  { %p4671_p0 = scmp.ne.s32.totalorder %s201_s23, %s4670_s22  ;;  %p4675_p1 = scmp.lt.s32.totalorder %s201_s23, %s201_s23 }
  0xaa   :  { %p4676_p2 = scmp.lt.s32.totalorder %s4674_s5, %s4670_s22 }
  0xac   :  { %p4677_p3 = por %p4676_p2, %p4675_p1 }
  0xae   :  { %p4678_p4 = pnand %p4677_p3, %p4671_p0 }
  0xb0   :  { %4681 = shalt.err (!%p4678_p4)
}
  0xb1   :  { %203 = dma.hbm_to_vmem [thread:$0]  %s5376_s17, 16, %s201_s23, [#allocation24]  }
  0xb2   :  { %4702 = dma.done.wait [#allocation3], 256  }
  0xb3   :  { %4703 = vsyncadd [#allocation3], 4294967040 }
  0xb4   :  { %4704 = dma.done.wait [#allocation6], 512  }
  0xb5   :  { %4705 = vsyncadd [#allocation6], 4294966784 }
  0xb6   :  { %4706 = dma.done.wait [#allocation9], 96  }
  0xb7   :  { %4707 = vsyncadd [#allocation9], 4294967200 }
  0xb8   :  { %4708 = dma.done.wait [#allocation12], 80  }
  0xb9   :  { %4709 = vsyncadd [#allocation12], 4294967216 }
  0xba   :  { %4710 = dma.done.wait [#allocation15], 32  }
  0xbb   :  { %4711 = vsyncadd [#allocation15], 4294967264 }
  0xbc   :  { %4712 = dma.done.wait [#allocation18], 528  }
  0xbd   :  { %4713 = vsyncadd [#allocation18], 4294966768 }
  0xbe   :  { %4714 = dma.done.wait [#allocation21], 528  }
  0xbf   :  { %4715 = vsyncadd [#allocation21], 4294966768 }
  0xc0   :  { %4716 = dma.done.wait [#allocation24], 528  }
  0xc1   :  { %4717 = vsyncadd [#allocation24], 4294966768  ;;  %vm263_vm0 = vcmask 261120   ;;  %v4924_v0 = vld [vmem:[#allocation2] sm:$0xff]  ;;  %v4926_v1 = vld [vmem:[#allocation2 + $0x8] sm:$0xff]  ;;  %v4739_v44 = vmov 0.0  }
  0xc2   :  { %v264_v2 = vsel %vm263_vm0, %v4924_v0, 0.0  ;;  %v267_v3 = vsel %vm263_vm0, %v4926_v1, 0.0  ;;  %v321_v14 = vld [vmem:[%s5365_s6 + $0x18] sm:$0xff]  ;;  %v320_v15 = vld [vmem:[%s5365_s6 + $0x10] sm:$0xff]  ;;  %v319_v16 = vld [vmem:[%s5365_s6 + $0x8] sm:$0xff]  ;;  %4036 = vmatprep.subr.mxu0 %v4739_v44  ;;  %vm4740_vm5 = vmmov 0  }
  0xc3   :  { %265 = vadd.xlane.f32.xlu0 %v264_v2  ;;  %4015 = vmatprep.subr.mxu1 %v321_v14  ;;  %v318_v17 = vld [vmem:[%s5365_s6] sm:$0xff]  ;;  %v3828_v34 = vld [vmem:[#allocation10] ss:$0 sm:$0xff]  ;;  %v3829_v37 = vld [vmem:[#allocation11] ss:$0 sm:$0xff]  ;;  %s4741_s6 = smov 96  }
  0xc4   :  { %4016 = vmatpush3.msra.mxu1 %v321_v14  ;;  %4038 = vmatprep.mubr.msk.f32.mxu0 %vm4740_vm5, %v4739_v44  ;;  %v3830_v45 = vld [vmem:[#allocation13] ss:$0 sm:$0xff]  ;;  %s4742_s24 = smov 88   ;;  %s4743_s20 = smov 80   ;;  %vm415_vm6 = vcmask 64512   ;;  %vm1442_vm7 = vcmask 130048  }
  0xc5   :  { %4017 = vmatprep.subr.mxu1 %v320_v15  ;;  %s4744_s7 = smov 72   ;;  %s4745_s12 = smov 120   ;;  %vm1444_vm8 = vcmask 195584  }
  0xc6   :  { %4018 = vmatpush3.msra.mxu1 %v320_v15  ;;  %s4746_s30 = smov 104   ;;  %s4747_s0 = smov 112  }
  0xc7   :  { %268 = vadd.xlane.f32.xlu0 %v267_v3  ;;  %4019 = vmatprep.subr.mxu1 %v319_v16  ;;  %s4748_s11 = smov 56   ;;  %s4749_s14 = smov 48  }
  0xc8   :  { %4020 = vmatpush3.msra.mxu1 %v319_v16  ;;  %s4750_s21 = smov 64   ;;  %s4751_s1 = smov 40  }
  0xc9   :  { %4021 = vmatprep.subr.mxu1 %v318_v17  ;;  %s4752_s16 = smov 24  }
  0xca   :  { %4022 = vmatpush3.msra.mxu1 %v318_v17 }
  0xcb   :  { %4026 = vmatprep.subr.mxu1 %v4739_v44 }
 0x14c   :  { %v266_v4 = vpop.xlane.xlu0 %265 }
 0x14d   :  { %v271_v5 = vmul.f32 0.03125, %v266_v4  ;;  %v257_v4 = vld [vmem:[#allocation7] sm:$0xff] }
 0x14f   :  { %v273_v6 = vsub.f32 %v4924_v0, %v271_v5 }
 0x150   :  { %v269_v7 = vpop.xlane.xlu0 %268 }
 0x151   :  { %v272_v8 = vmul.f32 0.03125, %v269_v7  ;;  %v275_v9 = vmul.f32 %v273_v6, %v273_v6  ;;  %v308_v35 = vmul.f32 %v3828_v34, %v273_v6 }
 0x153   :  { %v274_v10 = vsub.f32 %v4926_v1, %v272_v8  ;;  %v277_v11 = vsel %vm263_vm0, %v275_v9, 0.0 }
 0x154   :  { %278 = vadd.xlane.f32.xlu1 %v277_v11 }
 0x155   :  { %v276_v12 = vmul.f32 %v274_v10, %v274_v10  ;;  %v309_v39 = vmul.f32 %v3828_v34, %v274_v10 }
 0x157   :  { %v280_v13 = vsel %vm263_vm0, %v276_v12, 0.0 }
 0x158   :  { %281 = vadd.xlane.f32.xlu1 %v280_v13 }
 0x1dd   :  { %v279_v18 = vpop.xlane.xlu1 %278 }
 0x1de   :  { %v284_v19 = vmul.f32 0.032258064, %v279_v18  ;;  %v258_v18 = vld [vmem:[#allocation7 + $0x8] sm:$0xff] }
 0x1e0   :  { %4294 = vrsqrt.f32 %v284_v19  ;;  %vm288_vm1 = vcmp.eq.f32.partialorder %v284_v19, inf  ;;  %v291_v24 = vand.u32 2147483648, %v284_v19  ;;  %vm290_vm2 = vcmp.eq.f32.partialorder %v284_v19, 0.0 }
 0x1e1   :  { %v282_v20 = vpop.xlane.xlu1 %281 }
 0x1e2   :  { %v285_v21 = vmul.f32 0.032258064, %v282_v20 }
 0x1e4   :  { %4296 = vrsqrt.f32 %v285_v21  ;;  %vm295_vm3 = vcmp.eq.f32.partialorder %v285_v21, inf  ;;  %v298_v30 = vand.u32 2147483648, %v285_v21  ;;  %vm297_vm4 = vcmp.eq.f32.partialorder %v285_v21, 0.0 }
 0x1ed   :  { %v4295_v22 = vpop.eup %4294 }
 0x1ee   :  { %v287_v23 = vmul.f32 %v4295_v22, %v284_v19 }
 0x1f0   :  { %v289_v25 = vsel %vm288_vm1, %v284_v19, %v287_v23 }
 0x1f1   :  { %v4297_v26 = vpop.eup %4296  ;;  %v292_v27 = vsel %vm290_vm2, %v291_v24, %v289_v25  ;;  %vm3718_vm2 = vcmask 523264  }
 0x1f2   :  { %v294_v28 = vmul.f32 %v4297_v26, %v285_v21  ;;  %v300_v29 = vadd.f32 1e-06, %v292_v27 }
 0x1f4   :  { %v296_v31 = vsel %vm295_vm3, %v285_v21, %v294_v28  ;;  %4298 = vrcp.f32 %v300_v29 }
 0x1f5   :  { %v299_v32 = vsel %vm297_vm4, %v298_v30, %v296_v31 }
 0x1f6   :  { %v301_v33 = vadd.f32 1e-06, %v299_v32 }
 0x1f8   :  { %4300 = vrcp.f32 %v301_v33 }
 0x201   :  { %v4299_v36 = vpop.eup %4298 }
 0x202   :  { %v310_v38 = vmul.f32 %v4299_v36, %v308_v35 }
 0x204   :  { %v316_v40 = vadd.f32 %v3829_v37, %v310_v38 }
 0x205   :  { %v4301_v41 = vpop.eup %4300 }
 0x206   :  { %v311_v42 = vmul.f32 %v4301_v41, %v309_v39  ;;  %4023 = vmatprep.mubr.msk.f32.mxu1 %vm263_vm0, %v316_v40 }
 0x208   :  { %v317_v43 = vadd.f32 %v3829_v37, %v311_v42 }
 0x20a   :  { %4024 = vmatmul.mubr.msk.f32.vlgmr.msra.gmra.mxu1 %vm263_vm0, %v317_v43 }
 0x20b   :  { %4028 = vmatprep.mubr.msk.f32.mxu1 %vm4740_vm5, %v4739_v44 }
 0x2ca   :  { %v4025_v46 = vpop.f32.mrf.mxu1 }
 0x2cb   :  { %v4956_v47 = vadd.f32 %v4025_v46, %v3830_v45 }
 0x2cc   :  { %v401_v48 = vpop.f32.mrf.mxu1 }
 0x2cd   :  { %v4958_v49 = vadd.f32 %v3830_v45, %v401_v48  ;;  %726 = vrot.lane.b32.xlu1 %v4956_v47, %s4741_s6  ;;  %v411_v51 = vmul.f32 0.35355338, %v4956_v47 }
 0x2cf   :  { %413 = vrot.lane.b32.xlu0 %v4958_v49, %s4741_s6  ;;  %v410_v50 = vmul.f32 0.35355338, %v4958_v49 }
 0x2d1   :  { %493 = vrot.lane.b32.xlu1 %v4958_v49, %s4742_s24 }
 0x2d3   :  { %805 = vrot.lane.b32.xlu0 %v4956_v47, %s4742_s24 }
 0x2d5   :  { %571 = vrot.lane.b32.xlu1 %v4958_v49, %s4743_s20 }
 0x2d7   :  { %649 = vrot.lane.b32.xlu0 %v4958_v49, %s4744_s7 }
 0x2d9   :  { %491 = vrot.lane.b32.xlu1 %v410_v50, %s4745_s12 }
 0x2db   :  { %647 = vrot.lane.b32.xlu0 %v410_v50, %s4746_s30 }
 0x2dd   :  { %569 = vrot.lane.b32.xlu1 %v410_v50, %s4747_s0 }
 0x2df   :  { %883 = vrot.lane.b32.xlu0 %v4956_v47, %s4743_s20 }
 0x2e1   :  { %803 = vrot.lane.b32.xlu1 %v411_v51, %s4745_s12 }
 0x2e3   :  { %881 = vrot.lane.b32.xlu0 %v411_v51, %s4747_s0 }
 0x2e5   :  { %961 = vrot.lane.b32.xlu1 %v4956_v47, %s4744_s7 }
 0x2e9   :  { %959 = vrot.lane.b32.xlu1 %v411_v51, %s4746_s30 }
 0x33f   :  { %v727_v52 = vpop.permute.xlu1 %726 }
 0x341   :  { %v414_v53 = vpop.permute.xlu0 %413 }
 0x342   :  { %4027 = vmatpush3.xpose.msk.msra.mxu1 %vm415_vm6, %v414_v53 }
 0x343   :  { %v494_v54 = vpop.permute.xlu1 %493  ;;  %4031 = vmatprep.subr.mxu1 %v4739_v44 }
 0x345   :  { %v806_v55 = vpop.permute.xlu0 %805  ;;  %4029 = vmatmul.mubr.msk.f32.vlgmr.msra.gmra.mxu1 %vm415_vm6, %v410_v50 }
 0x346   :  { %4032 = vmatpush3.xpose.msk.msra.mxu1 %vm415_vm6, %v494_v54  ;;  %4033 = vmatprep.mubr.msk.f32.mxu1 %vm4740_vm5, %v4739_v44 }
 0x347   :  { %v572_v56 = vpop.permute.xlu1 %571  ;;  %4041 = vmatprep.subr.mxu1 %v4739_v44 }
 0x348   :  { %4037 = vmatpush3.xpose.msk.msra.mxu0 %vm415_vm6, %v572_v56 }
 0x349   :  { %v650_v57 = vpop.permute.xlu0 %649  ;;  %4046 = vmatprep.subr.mxu0 %v4739_v44 }
 0x34b   :  { %v492_v58 = vpop.permute.xlu1 %491 }
 0x34c   :  { %4034 = vmatmul.mubr.msk.f32.vlgmr.msra.gmra.mxu1 %vm415_vm6, %v492_v58 }
 0x34d   :  { %4042 = vmatpush3.xpose.msk.msra.mxu1 %vm415_vm6, %v650_v57  ;;  %v648_v59 = vpop.permute.xlu0 %647  ;;  %4043 = vmatprep.mubr.msk.f32.mxu1 %vm4740_vm5, %v4739_v44 }
 0x34e   :  { %4051 = vmatprep.subr.mxu1 %v4739_v44 }
 0x34f   :  { %v570_v60 = vpop.permute.xlu1 %569 }
 0x350   :  { %4039 = vmatmul.mubr.msk.f32.vlgmr.msra.gmra.mxu0 %vm415_vm6, %v570_v60  ;;  %4044 = vmatmul.mubr.msk.f32.vlgmr.msra.gmra.mxu1 %vm415_vm6, %v648_v59 }
 0x351   :  { %4047 = vmatpush3.xpose.msk.msra.mxu0 %vm415_vm6, %v727_v52  ;;  %4052 = vmatpush3.xpose.msk.msra.mxu1 %vm415_vm6, %v806_v55  ;;  %v884_v61 = vpop.permute.xlu0 %883 }
 0x352   :  { %4048 = vmatprep.mubr.msk.f32.mxu0 %vm4740_vm5, %v4739_v44  ;;  %4056 = vmatprep.subr.mxu0 %v4739_v44 }
 0x353   :  { %v804_v62 = vpop.permute.xlu1 %803  ;;  %4053 = vmatprep.mubr.msk.f32.mxu1 %vm4740_vm5, %v4739_v44  ;;  %4061 = vmatprep.subr.mxu1 %v4739_v44 }
 0x354   :  { %4049 = vmatmul.mubr.msk.f32.vlgmr.msra.gmra.mxu0 %vm415_vm6, %v411_v51  ;;  %4054 = vmatmul.mubr.msk.f32.vlgmr.msra.gmra.mxu1 %vm415_vm6, %v804_v62 }
 0x355   :  { %4057 = vmatpush3.xpose.msk.msra.mxu0 %vm415_vm6, %v884_v61  ;;  %4058 = vmatprep.mubr.msk.f32.mxu0 %vm4740_vm5, %v4739_v44  ;;  %v882_v63 = vpop.permute.xlu0 %881 }
 0x356   :  { %4063 = vmatprep.mubr.msk.f32.mxu1 %vm4740_vm5, %v4739_v44  ;;  %4066 = vmatprep.subr.mxu0 %v4739_v44 }
 0x357   :  { %v962_v2 = vpop.permute.xlu1 %961 }
 0x358   :  { %4059 = vmatmul.mubr.msk.f32.vlgmr.msra.gmra.mxu0 %vm415_vm6, %v882_v63  ;;  %4062 = vmatpush3.xpose.msk.msra.mxu1 %vm415_vm6, %v962_v2 }
 0x359   :  { %4071 = vmatprep.subr.mxu1 %v4739_v44  ;;  %4068 = vmatprep.mubr.msk.f32.mxu0 %vm4740_vm5, %v4739_v44 }
 0x35b   :  { %v960_v3 = vpop.permute.xlu1 %959 }
 0x35c   :  { %4064 = vmatmul.mubr.msk.f32.vlgmr.msra.gmra.mxu1 %vm415_vm6, %v960_v3 }
 0x35d   :  { %4073 = vmatprep.mubr.msk.f32.mxu1 %vm4740_vm5, %v4739_v44 }
 0x405   :  { %v487_v5 = vpop.f32.mrf.mxu1 }
 0x406   :  { %v488_v6 = vadd.f32 %v487_v5, %v257_v4 }
 0x407   :  { %v4030_v7 = vpop.f32.mrf.mxu1 }
 0x408   :  { %v1037_v8 = vsel %vm415_vm6, %v488_v6, -inf }
 0x409   :  { %1038 = vmax.xlane.f32.xlu0 %v1037_v8 }
 0x40c   :  { %v565_v9 = vpop.f32.mrf.mxu1 }
 0x40d   :  { %v566_v10 = vadd.f32 %v565_v9, %v257_v4 }
 0x40e   :  { %v4035_v11 = vpop.f32.mrf.mxu1 }
 0x40f   :  { %v1040_v12 = vsel %vm415_vm6, %v566_v10, -inf }
 0x410   :  { %v643_v13 = vpop.f32.mrf.mxu0  ;;  %1041 = vmax.xlane.f32.xlu1 %v1040_v12  ;;  %v721_v14 = vpop.f32.mrf.mxu1 }
 0x411   :  { %v644_v15 = vadd.f32 %v643_v13, %v257_v4  ;;  %v722_v19 = vadd.f32 %v721_v14, %v257_v4 }
 0x412   :  { %v4040_v16 = vpop.f32.mrf.mxu0  ;;  %v4045_v17 = vpop.f32.mrf.mxu1 }
 0x413   :  { %v1043_v20 = vsel %vm415_vm6, %v644_v15, -inf  ;;  %v1046_v27 = vsel %vm415_vm6, %v722_v19, -inf }
 0x414   :  { %v799_v21 = vpop.f32.mrf.mxu0  ;;  %1044 = vmax.xlane.f32.xlu0 %v1043_v20  ;;  %v877_v22 = vpop.f32.mrf.mxu1 }
 0x415   :  { %v878_v23 = vadd.f32 %v877_v22, %v258_v18  ;;  %v800_v26 = vadd.f32 %v799_v21, %v258_v18 }
 0x416   :  { %v4050_v24 = vpop.f32.mrf.mxu0  ;;  %v4055_v25 = vpop.f32.mrf.mxu1 }
 0x417   :  { %v1052_v28 = vsel %vm415_vm6, %v878_v23, -inf  ;;  %v1049_v32 = vsel %vm415_vm6, %v800_v26, -inf }
 0x418   :  { %v955_v29 = vpop.f32.mrf.mxu0  ;;  %1047 = vmax.xlane.f32.xlu0 %v1046_v27  ;;  %1053 = vmax.xlane.f32.xlu1 %v1052_v28 }
 0x419   :  { %v956_v31 = vadd.f32 %v955_v29, %v258_v18 }
 0x41a   :  { %v4060_v30 = vpop.f32.mrf.mxu0 }
 0x41b   :  { %v1055_v36 = vsel %vm415_vm6, %v956_v31, -inf }
 0x41c   :  { %1050 = vmax.xlane.f32.xlu0 %v1049_v32  ;;  %v1033_v33 = vpop.f32.mrf.mxu1 }
 0x41d   :  { %v1034_v34 = vadd.f32 %v1033_v33, %v258_v18 }
 0x41e   :  { %v4065_v35 = vpop.f32.mrf.mxu1 }
 0x41f   :  { %v1058_v37 = vsel %vm415_vm6, %v1034_v34, -inf }
 0x420   :  { %1056 = vmax.xlane.f32.xlu0 %v1055_v36  ;;  %1059 = vmax.xlane.f32.xlu1 %v1058_v37 }
 0x431   :  { %1201 = vrot.lane.b32.xlu1 %v4958_v49, %s4748_s11 }
 0x435   :  { %1277 = vrot.lane.b32.xlu1 %v4958_v49, %s4749_s14 }
 0x436   :  { %1125 = vrot.lane.b32.xlu0 %v4958_v49, %s4750_s21 }
 0x439   :  { %1353 = vrot.lane.b32.xlu1 %v4958_v49, %s4751_s1 }
 0x43a   :  { %1446 = vrot.lane.b32.xlu0 %v4956_v47, %s4750_s21 }
 0x43d   :  { %1522 = vrot.lane.b32.xlu1 %v4956_v47, %s4748_s11 }
 0x492   :  { %v1039_v38 = vpop.xlane.xlu0 %1038 }
 0x493   :  { %v1061_v39 = vsub.f32 %v488_v6, %v1039_v38 }
 0x495   :  { %v1069_v40 = vmul.f32 1.442695, %v1061_v39 }
 0x497   :  { %4302 = vpow2.f32 %v1069_v40 }
 0x499   :  { %v1042_v41 = vpop.xlane.xlu1 %1041 }
 0x49a   :  { %v1062_v42 = vsub.f32 %v566_v10, %v1042_v41 }
 0x49c   :  { %v1071_v43 = vmul.f32 1.442695, %v1062_v42 }
 0x49d   :  { %v1045_v45 = vpop.xlane.xlu0 %1044 }
 0x49e   :  { %4304 = vpow2.f32 %v1071_v43  ;;  %v1063_v46 = vsub.f32 %v644_v15, %v1045_v45 }
 0x4a0   :  { %v1073_v48 = vmul.f32 1.442695, %v1063_v46 }
 0x4a1   :  { %v1048_v50 = vpop.xlane.xlu0 %1047  ;;  %v1054_v51 = vpop.xlane.xlu1 %1053 }
 0x4a2   :  { %4306 = vpow2.f32 %v1073_v48  ;;  %v1064_v52 = vsub.f32 %v722_v19, %v1048_v50  ;;  %v1066_v49 = vsub.f32 %v878_v23, %v1054_v51 }
 0x4a4   :  { %v4303_v53 = vpop.eup %4302  ;;  %v1075_v54 = vmul.f32 1.442695, %v1064_v52  ;;  %v1079_v55 = vmul.f32 1.442695, %v1066_v49 }
 0x4a5   :  { %v1051_v56 = vpop.xlane.xlu0 %1050  ;;  %v1085_v57 = vsel %vm415_vm6, %v4303_v53, 0.0 }
 0x4a6   :  { %4308 = vpow2.f32 %v1075_v54  ;;  %v1065_v58 = vsub.f32 %v800_v26, %v1051_v56  ;;  %1086 = vadd.xlane.f32.xlu0 %v1085_v57  ;;  %v1766_v56 = vld [vmem:[%s5367_s8 + $0x8] sm:$0xff] }
 0x4a7   :  { %4310 = vpow2.f32 %v1079_v55  ;;  %v1767_v55 = vld [vmem:[%s5367_s8 + $0x10] sm:$0xff] }
 0x4a8   :  { %v1077_v59 = vmul.f32 1.442695, %v1065_v58 }
 0x4a9   :  { %v1057_v60 = vpop.xlane.xlu0 %1056  ;;  %v1060_v61 = vpop.xlane.xlu1 %1059 }
 0x4aa   :  { %4312 = vpow2.f32 %v1077_v59  ;;  %v1067_v62 = vsub.f32 %v956_v31, %v1057_v60  ;;  %v1068_v63 = vsub.f32 %v1034_v34, %v1060_v61  ;;  %v1765_v59 = vld [vmem:[%s5367_s8] sm:$0xff] }
 0x4ab   :  { %v4305_v2 = vpop.eup %4304 }
 0x4ac   :  { %v1081_v3 = vmul.f32 1.442695, %v1067_v62  ;;  %v1083_v4 = vmul.f32 1.442695, %v1068_v63  ;;  %v1088_v5 = vsel %vm415_vm6, %v4305_v2, 0.0 }
 0x4ad   :  { %v1126_v6 = vpop.permute.xlu0 %1125  ;;  %1089 = vadd.xlane.f32.xlu1 %v1088_v5  ;;  %v1202_v7 = vpop.permute.xlu1 %1201 }
 0x4ae   :  { %4314 = vpow2.f32 %v1081_v3  ;;  %4067 = vmatpush3.msra.mxu0 %v1126_v6  ;;  %4072 = vmatpush3.msra.mxu1 %v1202_v7 }
 0x4af   :  { %v4307_v8 = vpop.eup %4306  ;;  %4316 = vpow2.f32 %v1083_v4  ;;  %4076 = vmatprep.subr.mxu0 %v4739_v44  ;;  %4081 = vmatprep.subr.mxu1 %v4739_v44 }
 0x4b0   :  { %v1091_v9 = vsel %vm415_vm6, %v4307_v8, 0.0 }
 0x4b1   :  { %1092 = vadd.xlane.f32.xlu0 %v1091_v9  ;;  %v1278_v20 = vpop.permute.xlu1 %1277  ;;  %v1447_v21 = vpop.permute.xlu0 %1446 }
 0x4b3   :  { %v4309_v10 = vpop.eup %4308 }
 0x4b4   :  { %v1094_v11 = vsel %vm415_vm6, %v4309_v10, 0.0  ;;  %v4311_v12 = vpop.eup %4310 }
 0x4b5   :  { %1095 = vadd.xlane.f32.xlu1 %v1094_v11  ;;  %v1100_v15 = vsel %vm415_vm6, %v4311_v12, 0.0  ;;  %v1354_v22 = vpop.permute.xlu1 %1353 }
 0x4b7   :  { %v4313_v13 = vpop.eup %4312 }
 0x4b8   :  { %v1097_v14 = vsel %vm415_vm6, %v4313_v13, 0.0 }
 0x4b9   :  { %1098 = vadd.xlane.f32.xlu0 %v1097_v14  ;;  %1101 = vadd.xlane.f32.xlu1 %v1100_v15  ;;  %v1523_v24 = vpop.permute.xlu1 %1522 }
 0x4bb   :  { %v5048_v16 = vpop.eup %4314 }
 0x4bc   :  { %v5050_v17 = vpop.eup %4316  ;;  %v1103_v18 = vsel %vm415_vm6, %v5048_v16, 0.0 }
 0x4bd   :  { %1104 = vadd.xlane.f32.xlu0 %v1103_v18  ;;  %v1106_v19 = vsel %vm415_vm6, %v5050_v17, 0.0 }
 0x4be   :  { %1107 = vadd.xlane.f32.xlu1 %v1106_v19 }
 0x4cf   :  { %1674 = vrot.lane.b32.xlu1 %v4956_v47, %s4751_s1 }
 0x4d3   :  { %1598 = vrot.lane.b32.xlu0 %v4956_v47, %s4749_s14 }
 0x52f   :  { %v1087_v23 = vpop.xlane.xlu0 %1086 }
 0x530   :  { %4318 = vrcp.f32 %v1087_v23 }
 0x536   :  { %v1090_v25 = vpop.xlane.xlu1 %1089 }
 0x537   :  { %4320 = vrcp.f32 %v1090_v25 }
 0x53a   :  { %v1093_v26 = vpop.xlane.xlu0 %1092 }
 0x53b   :  { %4322 = vrcp.f32 %v1093_v26 }
 0x53d   :  { %v4319_v27 = vpop.eup %4318 }
 0x53e   :  { %v1096_v28 = vpop.xlane.xlu1 %1095  ;;  %v1117_v29 = vmul.f32 %v4319_v27, %v4303_v53  ;;  %v1768_v53 = vld [vmem:[%s5367_s8 + $0x18] sm:$0xff] }
 0x53f   :  { %4324 = vrcp.f32 %v1096_v28 }
 0x540   :  { %4069 = vmatmul.mubr.msk.f32.vlgmr.msra.gmra.mxu0 %vm415_vm6, %v1117_v29 }
 0x541   :  { %4077 = vmatpush3.msra.mxu0 %v1278_v20  ;;  %4078 = vmatprep.mubr.msk.f32.mxu0 %vm4740_vm5, %v4739_v44 }
 0x542   :  { %v1099_v47 = vpop.xlane.xlu0 %1098  ;;  %v1102_v30 = vpop.xlane.xlu1 %1101  ;;  %4086 = vmatprep.subr.mxu0 %v4739_v44 }
 0x543   :  { %4326 = vrcp.f32 %v1099_v47 }
 0x544   :  { %v4321_v31 = vpop.eup %4320  ;;  %4328 = vrcp.f32 %v1102_v30 }
 0x545   :  { %v1118_v32 = vmul.f32 %v4321_v31, %v4305_v2 }
 0x546   :  { %v1105_v33 = vpop.xlane.xlu0 %1104 }
 0x547   :  { %4330 = vrcp.f32 %v1105_v33  ;;  %v1108_v34 = vpop.xlane.xlu1 %1107  ;;  %4074 = vmatmul.mubr.msk.f32.vlgmr.msra.gmra.mxu1 %vm415_vm6, %v1118_v32 }
 0x548   :  { %v4323_v35 = vpop.eup %4322  ;;  %4332 = vrcp.f32 %v1108_v34  ;;  %4082 = vmatpush3.msra.mxu1 %v1354_v22  ;;  %4083 = vmatprep.mubr.msk.f32.mxu1 %vm4740_vm5, %v4739_v44  ;;  %v3859_v22 = vld [vmem:[#allocation14] ss:$0 sm:$0xff] }
 0x549   :  { %v1119_v36 = vmul.f32 %v4323_v35, %v4307_v8  ;;  %4091 = vmatprep.subr.mxu1 %v4739_v44 }
 0x54a   :  { %v1599_v43 = vpop.permute.xlu0 %1598 }
 0x54b   :  { %4079 = vmatmul.mubr.msk.f32.vlgmr.msra.gmra.mxu0 %vm415_vm6, %v1119_v36  ;;  %v1675_v46 = vpop.permute.xlu1 %1674 }
 0x54c   :  { %v4325_v37 = vpop.eup %4324  ;;  %4087 = vmatpush3.msra.mxu0 %v1447_v21  ;;  %4088 = vmatprep.mubr.msk.f32.mxu0 %vm4740_vm5, %v4739_v44 }
 0x54d   :  { %v1120_v38 = vmul.f32 %v4325_v37, %v4309_v10  ;;  %4096 = vmatprep.subr.mxu0 %v4739_v44  ;;  %v2012_v37 = vld [vmem:[#allocation17 + $0x18] sm:$0xff] }
 0x54f   :  { %4084 = vmatmul.mubr.msk.f32.vlgmr.msra.gmra.mxu1 %vm415_vm6, %v1120_v38  ;;  %v2011_v38 = vld [vmem:[#allocation17 + $0x10] sm:$0xff] }
 0x550   :  { %v4327_v39 = vpop.eup %4326  ;;  %4092 = vmatpush3.msra.mxu1 %v1523_v24  ;;  %4093 = vmatprep.mubr.msk.f32.mxu1 %vm4740_vm5, %v4739_v44 }
 0x551   :  { %v4329_v40 = vpop.eup %4328  ;;  %4101 = vmatprep.subr.mxu1 %v4739_v44  ;;  %v1121_v41 = vmul.f32 %v4327_v39, %v4313_v13  ;;  %v2010_v39 = vld [vmem:[#allocation17 + $0x8] sm:$0xff] }
 0x552   :  { %v1122_v42 = vmul.f32 %v4329_v40, %v4311_v12  ;;  %v2009_v40 = vld [vmem:[#allocation17] sm:$0xff] }
 0x553   :  { %4089 = vmatmul.mubr.msk.f32.vlgmr.msra.gmra.mxu0 %vm415_vm6, %v1121_v41  ;;  %v255_v41 = vld [vmem:[#allocation5] sm:$0xff] }
 0x554   :  { %v4331_v45 = vpop.eup %4330  ;;  %4094 = vmatmul.mubr.msk.f32.vlgmr.msra.gmra.mxu1 %vm415_vm6, %v1122_v42  ;;  %4097 = vmatpush3.msra.mxu0 %v1599_v43  ;;  %v1918_v42 = vld [vmem:[%s5369_s10 + $0x18] sm:$0xff]  ;;  %v1917_v43 = vld [vmem:[%s5369_s10 + $0x10] sm:$0xff] }
 0x555   :  { %v4333_v48 = vpop.eup %4332  ;;  %4102 = vmatpush3.msra.mxu1 %v1675_v46  ;;  %4098 = vmatprep.mubr.msk.f32.mxu0 %vm4740_vm5, %v4739_v44  ;;  %v1123_v50 = vmul.f32 %v4331_v45, %v5048_v16  ;;  %v256_v45 = vld [vmem:[#allocation5 + $0x8] sm:$0xff]  ;;  %v1916_v46 = vld [vmem:[%s5369_s10 + $0x8] sm:$0xff] }
 0x556   :  { %4103 = vmatprep.mubr.msk.f32.mxu1 %vm4740_vm5, %v4739_v44  ;;  %v1124_v51 = vmul.f32 %v4333_v48, %v5050_v17  ;;  %4106 = vmatprep.subr.mxu0 %v1768_v53  ;;  %v1915_v48 = vld [vmem:[%s5369_s10] sm:$0xff] }
 0x557   :  { %4099 = vmatmul.mubr.msk.f32.vlgmr.msra.gmra.mxu0 %vm415_vm6, %v1123_v50  ;;  %4117 = vmatprep.subr.mxu1 %v1918_v42 }
 0x558   :  { %4104 = vmatmul.mubr.msk.f32.vlgmr.msra.gmra.mxu1 %vm415_vm6, %v1124_v51  ;;  %4107 = vmatpush3.msra.mxu0 %v1768_v53 }
 0x559   :  { %4108 = vmatprep.subr.mxu0 %v1767_v55  ;;  %4118 = vmatpush3.msra.mxu1 %v1918_v42 }
 0x55a   :  { %4109 = vmatpush3.msra.mxu0 %v1767_v55  ;;  %4119 = vmatprep.subr.mxu1 %v1917_v43 }
 0x55b   :  { %4110 = vmatprep.subr.mxu0 %v1766_v56  ;;  %4120 = vmatpush3.msra.mxu1 %v1917_v43 }
 0x55c   :  { %4111 = vmatpush3.msra.mxu0 %v1766_v56  ;;  %4121 = vmatprep.subr.mxu1 %v1916_v46 }
 0x55d   :  { %4112 = vmatprep.subr.mxu0 %v1765_v59  ;;  %4122 = vmatpush3.msra.mxu1 %v1916_v46 }
 0x55e   :  { %4113 = vmatpush3.msra.mxu0 %v1765_v59  ;;  %4123 = vmatprep.subr.mxu1 %v1915_v48 }
 0x55f   :  { %4128 = vmatprep.subr.mxu0 %v2012_v37  ;;  %4124 = vmatpush3.msra.mxu1 %v1915_v48 }
 0x560   :  { %4139 = vmatprep.subr.mxu1 %v4739_v44 }
 0x600   :  { %v1197_v52 = vpop.f32.mrf.mxu0 }
 0x602   :  { %v4070_v49 = vpop.f32.mrf.mxu0 }
 0x607   :  { %v1273_v54 = vpop.f32.mrf.mxu1 }
 0x608   :  { %1430 = vrot.lane.b32.xlu0 %v1273_v54, %s4723_s3 }
 0x609   :  { %v4075_v57 = vpop.f32.mrf.mxu1 }
 0x60b   :  { %v1349_v58 = vpop.f32.mrf.mxu0 }
 0x60c   :  { %1434 = vrot.lane.b32.xlu1 %v1349_v58, %s4724_s29 }
 0x60d   :  { %v4080_v60 = vpop.f32.mrf.mxu0 }
 0x60f   :  { %v1425_v61 = vpop.f32.mrf.mxu1 }
 0x610   :  { %1438 = vrot.lane.b32.xlu1 %v1425_v61, %s4752_s16 }
 0x611   :  { %v4085_v62 = vpop.f32.mrf.mxu1 }
 0x613   :  { %v1518_v63 = vpop.f32.mrf.mxu0 }
 0x614   :  { %v1594_v2 = vpop.f32.mrf.mxu1 }
 0x615   :  { %1751 = vrot.lane.b32.xlu0 %v1594_v2, %s4723_s3  ;;  %v4090_v3 = vpop.f32.mrf.mxu0 }
 0x616   :  { %v4095_v4 = vpop.f32.mrf.mxu1  ;;  %v3860_v3 = vld [vmem:[#allocation10 + $0x1] ss:$0 sm:$0xff] }
 0x617   :  { %v1670_v5 = vpop.f32.mrf.mxu0 }
 0x618   :  { %v1746_v6 = vpop.f32.mrf.mxu1 }
 0x619   :  { %1755 = vrot.lane.b32.xlu0 %v1670_v5, %s4724_s29  ;;  %1759 = vrot.lane.b32.xlu1 %v1746_v6, %s4752_s16  ;;  %v4100_v7 = vpop.f32.mrf.mxu0  ;;  %v3861_v6 = vld [vmem:[#allocation11 + $0x1] ss:$0 sm:$0xff] }
 0x61a   :  { %v4105_v8 = vpop.f32.mrf.mxu1 }
 0x67a   :  { %v1431_v9 = vpop.permute.xlu0 %1430 }
 0x67b   :  { %v1441_v11 = vsel %vm415_vm6, %v1197_v52, %v1431_v9 }
 0x67e   :  { %v1435_v10 = vpop.permute.xlu1 %1434 }
 0x67f   :  { %v1443_v12 = vsel %vm1442_vm7, %v1441_v11, %v1435_v10 }
 0x682   :  { %v1439_v13 = vpop.permute.xlu1 %1438 }
 0x683   :  { %v1445_v14 = vsel %vm1444_vm8, %v1443_v12, %v1439_v13 }
 0x684   :  { %4114 = vmatprep.mubr.msk.f32.mxu0 %vm263_vm0, %v1445_v14  ;;  %v3865_v14 = vld [vmem:[#allocation19] ss:$0 sm:$0xff] }
 0x687   :  { %v1752_v15 = vpop.permute.xlu0 %1751 }
 0x688   :  { %v1762_v16 = vsel %vm415_vm6, %v1518_v63, %v1752_v15 }
 0x68b   :  { %v1756_v17 = vpop.permute.xlu0 %1755  ;;  %v1760_v18 = vpop.permute.xlu1 %1759 }
 0x68c   :  { %v1763_v19 = vsel %vm1442_vm7, %v1762_v16, %v1756_v17 }
 0x68d   :  { %v1764_v20 = vsel %vm1444_vm8, %v1763_v19, %v1760_v18  ;;  %v3862_v19 = vld [vmem:[#allocation16] ss:$0 sm:$0xff] }
 0x68e   :  { %4115 = vmatmul.mubr.msk.f32.vlgmr.msra.gmra.mxu0 %vm263_vm0, %v1764_v20 }
 0x68f   :  { %4129 = vmatpush3.msra.mxu0 %v2012_v37  ;;  %4136 = vmatprep.mubr.msk.f32.mxu0 %vm263_vm0, %v255_v41 }
 0x690   :  { %4130 = vmatprep.subr.mxu0 %v2011_v38 }
 0x691   :  { %4131 = vmatpush3.msra.mxu0 %v2011_v38 }
 0x692   :  { %4132 = vmatprep.subr.mxu0 %v2010_v39 }
 0x693   :  { %4133 = vmatpush3.msra.mxu0 %v2010_v39 }
 0x694   :  { %4134 = vmatprep.subr.mxu0 %v2009_v40 }
 0x695   :  { %4135 = vmatpush3.msra.mxu0 %v2009_v40 }
 0x696   :  { %4137 = vmatmul.mubr.msk.f32.vlgmr.msra.gmra.mxu0 %vm263_vm0, %v256_v45  ;;  %4149 = vmatprep.subr.mxu0 %v4739_v44 }
 0x697   :  { %4151 = vmatprep.mubr.msk.f32.mxu0 %vm4740_vm5, %v4739_v44 }
 0x74e   :  { %v4116_v21 = vpop.f32.mrf.mxu0 }
 0x74f   :  { %v1851_v23 = vadd.f32 %v4116_v21, %v4926_v1 }
 0x750   :  { %v1841_v24 = vpop.f32.mrf.mxu0 }
 0x751   :  { %v5113_v25 = vadd.f32 %v3859_v22, %v1851_v23  ;;  %v1850_v26 = vadd.f32 %v1841_v24, %v4924_v0 }
 0x753   :  { %v5116_v27 = vadd.f32 %v3859_v22, %v1850_v26  ;;  %v1866_v28 = vsel %vm263_vm0, %v5113_v25, 0.0 }
 0x754   :  { %1867 = vadd.xlane.f32.xlu1 %v1866_v28 }
 0x755   :  { %v1863_v29 = vsel %vm263_vm0, %v5116_v27, 0.0 }
 0x756   :  { %1864 = vadd.xlane.f32.xlu0 %v1863_v29  ;;  %v4138_v13 = vpop.f32.mrf.mxu0 }
 0x757   :  { %v5160_v17 = vadd.f32 %v4138_v13, %v3865_v14 }
 0x758   :  { %v2092_v15 = vpop.f32.mrf.mxu0 }
 0x759   :  { %v5158_v16 = vadd.f32 %v3865_v14, %v2092_v15 }
 0x765   :  { %2263 = vrot.lane.b32.xlu1 %v5158_v16, %s4747_s0 }
 0x769   :  { %2341 = vrot.lane.b32.xlu1 %v5158_v16, %s4746_s30 }
 0x7dd   :  { %v1868_v47 = vpop.xlane.xlu1 %1867 }
 0x7de   :  { %v1870_v30 = vmul.f32 0.03125, %v1868_v47 }
 0x7df   :  { %v1865_v31 = vpop.xlane.xlu0 %1864 }
 0x7e0   :  { %v1869_v32 = vmul.f32 0.03125, %v1865_v31  ;;  %v5123_v1 = vsub.f32 %v5113_v25, %v1870_v30 }
 0x7e1   :  { %v2264_v18 = vpop.permute.xlu1 %2263 }
 0x7e2   :  { %v5126_v33 = vsub.f32 %v5116_v27, %v1869_v32  ;;  %v1874_v35 = vmul.f32 %v5123_v1, %v5123_v1  ;;  %v1906_v8 = vmul.f32 %v3860_v3, %v5123_v1  ;;  %4150 = vmatpush3.xpose.msk.msra.mxu0 %vm415_vm6, %v2264_v18 }
 0x7e3   :  { %4159 = vmatprep.subr.mxu0 %v4739_v44 }
 0x7e4   :  { %v1873_v0 = vmul.f32 %v5126_v33, %v5126_v33  ;;  %v1878_v36 = vsel %vm263_vm0, %v1874_v35, 0.0  ;;  %v1905_v4 = vmul.f32 %v3860_v3, %v5126_v33 }
 0x7e5   :  { %v2342_v29 = vpop.permute.xlu1 %2341 }
 0x7e6   :  { %v1875_v34 = vsel %vm263_vm0, %v1873_v0, 0.0 }
 0x7e7   :  { %1876 = vadd.xlane.f32.xlu0 %v1875_v34 }
 0x7eb   :  { %1879 = vadd.xlane.f32.xlu0 %v1878_v36  ;;  %v3868_v36 = vld [vmem:[#allocation8] ss:$0 sm:$0xff] }
 0x801   :  { %2185 = vrot.lane.b32.xlu0 %v5158_v16, %s4745_s12 }
 0x805   :  { %2501 = vrot.lane.b32.xlu0 %v5160_v17, %s4745_s12 }
 0x870   :  { %v1877_v50 = vpop.xlane.xlu0 %1876 }
 0x871   :  { %v1881_v51 = vmul.f32 0.032258064, %v1877_v50 }
 0x873   :  { %4334 = vrsqrt.f32 %v1881_v51  ;;  %vm1885_vm9 = vcmp.eq.f32.partialorder %v1881_v51, inf  ;;  %v1888_v55 = vand.u32 2147483648, %v1881_v51  ;;  %vm1887_vm10 = vcmp.eq.f32.partialorder %v1881_v51, 0.0 }
 0x874   :  { %v1880_v52 = vpop.xlane.xlu0 %1879 }
 0x875   :  { %v1882_v49 = vmul.f32 0.032258064, %v1880_v52 }
 0x877   :  { %4336 = vrsqrt.f32 %v1882_v49  ;;  %vm1892_vm11 = vcmp.eq.f32.partialorder %v1882_v49, inf  ;;  %v1895_v61 = vand.u32 2147483648, %v1882_v49  ;;  %vm1894_vm12 = vcmp.eq.f32.partialorder %v1882_v49, 0.0 }
 0x878   :  { %v2186_v28 = vpop.permute.xlu0 %2185 }
 0x87c   :  { %v2502_v47 = vpop.permute.xlu0 %2501 }
 0x880   :  { %v4335_v53 = vpop.eup %4334 }
 0x881   :  { %v1884_v54 = vmul.f32 %v4335_v53, %v1881_v51 }
 0x883   :  { %v1886_v56 = vsel %vm1885_vm9, %v1881_v51, %v1884_v54 }
 0x884   :  { %v4337_v57 = vpop.eup %4336  ;;  %v1889_v58 = vsel %vm1887_vm10, %v1888_v55, %v1886_v56 }
 0x885   :  { %v1897_v59 = vadd.f32 1e-06, %v1889_v58  ;;  %v1891_v60 = vmul.f32 %v4337_v57, %v1882_v49 }
 0x887   :  { %4338 = vrcp.f32 %v1897_v59  ;;  %v1893_v62 = vsel %vm1892_vm11, %v1882_v49, %v1891_v60  ;;  %v3877_v49 = vld [vmem:[#allocation8 + $0x1] ss:$0 sm:$0xff] }
 0x888   :  { %v1896_v63 = vsel %vm1894_vm12, %v1895_v61, %v1893_v62 }
 0x889   :  { %v1898_v2 = vadd.f32 1e-06, %v1896_v63 }
 0x88b   :  { %4340 = vrcp.f32 %v1898_v2 }
 0x894   :  { %v4339_v5 = vpop.eup %4338 }
 0x895   :  { %v1907_v7 = vmul.f32 %v4339_v5, %v1905_v4 }
 0x897   :  { %v1913_v9 = vadd.f32 %v3861_v6, %v1907_v7 }
 0x898   :  { %v4341_v10 = vpop.eup %4340 }
 0x899   :  { %v1908_v11 = vmul.f32 %v4341_v10, %v1906_v8  ;;  %4125 = vmatprep.mubr.msk.f32.mxu1 %vm263_vm0, %v1913_v9 }
 0x89b   :  { %v1914_v12 = vadd.f32 %v3861_v6, %v1908_v11 }
 0x89d   :  { %4126 = vmatmul.mubr.msk.f32.vlgmr.msra.gmra.mxu1 %vm263_vm0, %v1914_v12 }
 0x89e   :  { %4141 = vmatprep.mubr.msk.f32.mxu1 %vm4740_vm5, %v4739_v44  ;;  %4140 = vmatpush3.xpose.msk.msra.mxu1 %vm415_vm6, %v5158_v16 }
 0x89f   :  { %4144 = vmatprep.subr.mxu1 %v4739_v44 }
 0x95d   :  { %v4127_v20 = vpop.f32.mrf.mxu1 }
 0x95e   :  { %v2004_v21 = vadd.f32 %v4127_v20, %v3862_v19 }
 0x95f   :  { %v1998_v22 = vpop.f32.mrf.mxu1 }
 0x960   :  { %v2008_v23 = vmul.f32 0.35355338, %v2004_v21  ;;  %v1999_v24 = vadd.f32 %v3862_v19, %v1998_v22 }
 0x962   :  { %v2007_v26 = vmul.f32 0.35355338, %v1999_v24  ;;  %2499 = vrot.lane.b32.xlu1 %v2008_v23, %s4745_s12 }
 0x964   :  { %2261 = vrot.lane.b32.xlu0 %v2007_v26, %s4747_s0  ;;  %4142 = vmatmul.mubr.msk.f32.vlgmr.msra.gmra.mxu1 %vm415_vm6, %v2007_v26 }
 0x965   :  { %4145 = vmatpush3.xpose.msk.msra.mxu1 %vm415_vm6, %v2186_v28  ;;  %4146 = vmatprep.mubr.msk.f32.mxu1 %vm4740_vm5, %v4739_v44 }
 0x966   :  { %2183 = vrot.lane.b32.xlu1 %v2007_v26, %s4745_s12  ;;  %4154 = vmatprep.subr.mxu1 %v4739_v44 }
 0x968   :  { %2579 = vrot.lane.b32.xlu0 %v5160_v17, %s4747_s0 }
 0x96a   :  { %2339 = vrot.lane.b32.xlu1 %v2007_v26, %s4746_s30 }
 0x96c   :  { %2577 = vrot.lane.b32.xlu0 %v2008_v23, %s4747_s0 }
 0x96e   :  { %2657 = vrot.lane.b32.xlu1 %v5160_v17, %s4746_s30 }
 0x972   :  { %2655 = vrot.lane.b32.xlu1 %v2008_v23, %s4746_s30 }
 0x9d4   :  { %v2500_v30 = vpop.permute.xlu1 %2499 }
 0x9d6   :  { %v2262_v31 = vpop.permute.xlu0 %2261 }
 0x9d7   :  { %4152 = vmatmul.mubr.msk.f32.vlgmr.msra.gmra.mxu0 %vm415_vm6, %v2262_v31 }
 0x9d8   :  { %4160 = vmatpush3.xpose.msk.msra.mxu0 %vm415_vm6, %v5160_v17  ;;  %v2184_v32 = vpop.permute.xlu1 %2183  ;;  %4161 = vmatprep.mubr.msk.f32.mxu0 %vm4740_vm5, %v4739_v44 }
 0x9d9   :  { %4147 = vmatmul.mubr.msk.f32.vlgmr.msra.gmra.mxu1 %vm415_vm6, %v2184_v32  ;;  %4169 = vmatprep.subr.mxu0 %v4739_v44 }
 0x9da   :  { %4155 = vmatpush3.xpose.msk.msra.mxu1 %vm415_vm6, %v2342_v29  ;;  %v2580_v1 = vpop.permute.xlu0 %2579  ;;  %4156 = vmatprep.mubr.msk.f32.mxu1 %vm4740_vm5, %v4739_v44 }
 0x9db   :  { %4162 = vmatmul.mubr.msk.f32.vlgmr.msra.gmra.mxu0 %vm415_vm6, %v2008_v23  ;;  %4164 = vmatprep.subr.mxu1 %v4739_v44 }
 0x9dc   :  { %4170 = vmatpush3.xpose.msk.msra.mxu0 %vm415_vm6, %v2580_v1  ;;  %v2340_v33 = vpop.permute.xlu1 %2339  ;;  %4171 = vmatprep.mubr.msk.f32.mxu0 %vm4740_vm5, %v4739_v44 }
 0x9dd   :  { %4157 = vmatmul.mubr.msk.f32.vlgmr.msra.gmra.mxu1 %vm415_vm6, %v2340_v33  ;;  %4179 = vmatprep.subr.mxu0 %v4739_v44 }
 0x9de   :  { %4165 = vmatpush3.xpose.msk.msra.mxu1 %vm415_vm6, %v2502_v47  ;;  %v2578_v0 = vpop.permute.xlu0 %2577  ;;  %4166 = vmatprep.mubr.msk.f32.mxu1 %vm4740_vm5, %v4739_v44 }
 0x9df   :  { %4172 = vmatmul.mubr.msk.f32.vlgmr.msra.gmra.mxu0 %vm415_vm6, %v2578_v0  ;;  %4174 = vmatprep.subr.mxu1 %v4739_v44 }
 0x9e0   :  { %v2658_v34 = vpop.permute.xlu1 %2657  ;;  %4181 = vmatprep.mubr.msk.f32.mxu0 %vm4740_vm5, %v4739_v44 }
 0x9e1   :  { %4167 = vmatmul.mubr.msk.f32.vlgmr.msra.gmra.mxu1 %vm415_vm6, %v2500_v30 }
 0x9e2   :  { %4175 = vmatpush3.xpose.msk.msra.mxu1 %vm415_vm6, %v2658_v34  ;;  %4176 = vmatprep.mubr.msk.f32.mxu1 %vm4740_vm5, %v4739_v44 }
 0x9e3   :  { %4184 = vmatprep.subr.mxu1 %v4739_v44 }
 0x9e4   :  { %v2656_v35 = vpop.permute.xlu1 %2655 }
 0x9e5   :  { %4177 = vmatmul.mubr.msk.f32.vlgmr.msra.gmra.mxu1 %vm415_vm6, %v2656_v35 }
 0x9e6   :  { %4186 = vmatprep.mubr.msk.f32.mxu1 %vm4740_vm5, %v4739_v44 }
 0xa24   :  { %v2179_v37 = vpop.f32.mrf.mxu1 }
 0xa25   :  { %v2180_v38 = vadd.f32 %v3868_v36, %v2179_v37 }
 0xa26   :  { %v4143_v39 = vpop.f32.mrf.mxu1 }
 0xa27   :  { %v2733_v40 = vsel %vm415_vm6, %v2180_v38, -inf }
 0xa28   :  { %2734 = vmax.xlane.f32.xlu0 %v2733_v40 }
 0xa97   :  { %v2335_v41 = vpop.f32.mrf.mxu0 }
 0xa98   :  { %v2336_v42 = vadd.f32 %v3868_v36, %v2335_v41 }
 0xa99   :  { %v2257_v43 = vpop.f32.mrf.mxu1  ;;  %v4153_v45 = vpop.f32.mrf.mxu0 }
 0xa9a   :  { %v2258_v46 = vadd.f32 %v3868_v36, %v2257_v43  ;;  %v2739_v48 = vsel %vm415_vm6, %v2336_v42, -inf }
 0xa9b   :  { %v2495_v50 = vpop.f32.mrf.mxu0  ;;  %2740 = vmax.xlane.f32.xlu0 %v2739_v48  ;;  %v4148_v51 = vpop.f32.mrf.mxu1 }
 0xa9c   :  { %v2736_v52 = vsel %vm415_vm6, %v2258_v46, -inf  ;;  %v2496_v58 = vadd.f32 %v3877_v49, %v2495_v50 }
 0xa9d   :  { %v4163_v53 = vpop.f32.mrf.mxu0  ;;  %2737 = vmax.xlane.f32.xlu1 %v2736_v52  ;;  %v2413_v54 = vpop.f32.mrf.mxu1 }
 0xa9e   :  { %v2414_v55 = vadd.f32 %v3868_v36, %v2413_v54  ;;  %v2745_v3 = vsel %vm415_vm6, %v2496_v58, -inf }
 0xa9f   :  { %v4158_v56 = vpop.f32.mrf.mxu1  ;;  %v2651_v57 = vpop.f32.mrf.mxu0 }
 0xaa0   :  { %v2742_v59 = vsel %vm415_vm6, %v2414_v55, -inf  ;;  %v2652_v2 = vadd.f32 %v3877_v49, %v2651_v57 }
 0xaa1   :  { %v4173_v60 = vpop.f32.mrf.mxu0  ;;  %2743 = vmax.xlane.f32.xlu0 %v2742_v59  ;;  %v2573_v61 = vpop.f32.mrf.mxu1 }
 0xaa2   :  { %v2574_v62 = vadd.f32 %v3877_v49, %v2573_v61  ;;  %v2751_v8 = vsel %vm415_vm6, %v2652_v2, -inf }
 0xaa3   :  { %v4168_v63 = vpop.f32.mrf.mxu1 }
 0xaa4   :  { %v2748_v4 = vsel %vm415_vm6, %v2574_v62, -inf }
 0xaa5   :  { %2746 = vmax.xlane.f32.xlu0 %v2745_v3  ;;  %2749 = vmax.xlane.f32.xlu1 %v2748_v4  ;;  %v2729_v5 = vpop.f32.mrf.mxu1 }
 0xaa6   :  { %v2730_v6 = vadd.f32 %v3877_v49, %v2729_v5 }
 0xaa7   :  { %v4178_v7 = vpop.f32.mrf.mxu1 }
 0xaa8   :  { %v2754_v9 = vsel %vm415_vm6, %v2730_v6, -inf }
 0xaa9   :  { %2752 = vmax.xlane.f32.xlu0 %v2751_v8  ;;  %2755 = vmax.xlane.f32.xlu1 %v2754_v9 }
 0xab1   :  { %v2735_v10 = vpop.xlane.xlu0 %2734 }
 0xab2   :  { %v2757_v11 = vsub.f32 %v2180_v38, %v2735_v10 }
 0xab4   :  { %v2765_v12 = vmul.f32 1.442695, %v2757_v11 }
 0xab6   :  { %4342 = vpow2.f32 %v2765_v12 }
 0xaba   :  { %2897 = vrot.lane.b32.xlu1 %v5158_v16, %s4742_s24 }
 0xabe   :  { %2973 = vrot.lane.b32.xlu1 %v5158_v16, %s4743_s20 }
 0xabf   :  { %2821 = vrot.lane.b32.xlu0 %v5158_v16, %s4741_s6 }
 0xac2   :  { %3049 = vrot.lane.b32.xlu1 %v5158_v16, %s4744_s7 }
 0xac3   :  { %3140 = vrot.lane.b32.xlu0 %v5160_v17, %s4741_s6  ;;  %v5242_v13 = vpop.eup %4342 }
 0xac4   :  { %v2781_v14 = vsel %vm415_vm6, %v5242_v13, 0.0 }
 0xac6   :  { %3216 = vrot.lane.b32.xlu1 %v5160_v17, %s4742_s24 }
 0xae2   :  { %2782 = vadd.xlane.f32.xlu0 %v2781_v14 }
 0xb24   :  { %v2741_v15 = vpop.xlane.xlu0 %2740 }
 0xb25   :  { %v2759_v18 = vsub.f32 %v2336_v42, %v2741_v15 }
 0xb26   :  { %v2738_v19 = vpop.xlane.xlu1 %2737 }
 0xb27   :  { %v2769_v16 = vmul.f32 1.442695, %v2759_v18  ;;  %v2758_v20 = vsub.f32 %v2258_v46, %v2738_v19 }
 0xb29   :  { %4344 = vpow2.f32 %v2769_v16  ;;  %v2767_v21 = vmul.f32 1.442695, %v2758_v20 }
 0xb2a   :  { %v2744_v22 = vpop.xlane.xlu0 %2743 }
 0xb2b   :  { %4346 = vpow2.f32 %v2767_v21  ;;  %v2760_v23 = vsub.f32 %v2414_v55, %v2744_v22 }
 0xb2d   :  { %v2771_v24 = vmul.f32 1.442695, %v2760_v23 }
 0xb2e   :  { %v2747_v26 = vpop.xlane.xlu0 %2746  ;;  %v2750_v28 = vpop.xlane.xlu1 %2749 }
 0xb2f   :  { %4348 = vpow2.f32 %v2771_v24  ;;  %v2761_v29 = vsub.f32 %v2496_v58, %v2747_v26  ;;  %v2762_v47 = vsub.f32 %v2574_v62, %v2750_v28  ;;  %v3462_v24 = vld [vmem:[#allocation20 + $0x18] sm:$0xff]  ;;  %v3461_v26 = vld [vmem:[#allocation20 + $0x10] sm:$0xff]  ;;  %v3460_v28 = vld [vmem:[#allocation20 + $0x8] sm:$0xff] }
 0xb31   :  { %v2773_v30 = vmul.f32 1.442695, %v2761_v29  ;;  %v2775_v31 = vmul.f32 1.442695, %v2762_v47 }
 0xb32   :  { %v2753_v32 = vpop.xlane.xlu0 %2752  ;;  %v2756_v1 = vpop.xlane.xlu1 %2755 }
 0xb33   :  { %4350 = vpow2.f32 %v2773_v30  ;;  %v2763_v33 = vsub.f32 %v2652_v2, %v2753_v32  ;;  %v2764_v0 = vsub.f32 %v2730_v6, %v2756_v1  ;;  %v3459_v30 = vld [vmem:[#allocation20] sm:$0xff] }
 0xb34   :  { %4352 = vpow2.f32 %v2775_v31 }
 0xb35   :  { %v2777_v34 = vmul.f32 1.442695, %v2763_v33  ;;  %v2779_v35 = vmul.f32 1.442695, %v2764_v0 }
 0xb36   :  { %v4345_v36 = vpop.eup %4344  ;;  %v2822_v37 = vpop.permute.xlu0 %2821 }
 0xb37   :  { %v2898_v38 = vpop.permute.xlu1 %2897  ;;  %4354 = vpow2.f32 %v2777_v34  ;;  %4180 = vmatpush3.msra.mxu0 %v2822_v37  ;;  %v2787_v39 = vsel %vm415_vm6, %v4345_v36, 0.0 }
 0xb38   :  { %4185 = vmatpush3.msra.mxu1 %v2898_v38  ;;  %v4347_v40 = vpop.eup %4346  ;;  %4356 = vpow2.f32 %v2779_v35  ;;  %2788 = vadd.xlane.f32.xlu0 %v2787_v39 }
 0xb39   :  { %4189 = vmatprep.subr.mxu0 %v4739_v44  ;;  %v2784_v41 = vsel %vm415_vm6, %v4347_v40, 0.0  ;;  %4194 = vmatprep.subr.mxu1 %v4739_v44 }
 0xb3a   :  { %2785 = vadd.xlane.f32.xlu1 %v2784_v41  ;;  %v3141_v54 = vpop.permute.xlu0 %3140 }
 0xb3b   :  { %v2974_v58 = vpop.permute.xlu1 %2973 }
 0xb3c   :  { %v4349_v42 = vpop.eup %4348 }
 0xb3d   :  { %v2790_v43 = vsel %vm415_vm6, %v4349_v42, 0.0 }
 0xb3e   :  { %2791 = vadd.xlane.f32.xlu1 %v2790_v43 }
 0xb3f   :  { %v3050_v59 = vpop.permute.xlu1 %3049 }
 0xb40   :  { %v4351_v45 = vpop.eup %4350 }
 0xb41   :  { %v4353_v46 = vpop.eup %4352  ;;  %v2793_v48 = vsel %vm415_vm6, %v4351_v45, 0.0 }
 0xb42   :  { %2794 = vadd.xlane.f32.xlu0 %v2793_v48  ;;  %v2796_v50 = vsel %vm415_vm6, %v4353_v46, 0.0 }
 0xb43   :  { %2797 = vadd.xlane.f32.xlu1 %v2796_v50  ;;  %v3217_v60 = vpop.permute.xlu1 %3216 }
 0xb44   :  { %v5253_v51 = vpop.eup %4354 }
 0xb45   :  { %v5255_v52 = vpop.eup %4356  ;;  %v2799_v49 = vsel %vm415_vm6, %v5253_v51, 0.0 }
 0xb46   :  { %2800 = vadd.xlane.f32.xlu0 %v2799_v49  ;;  %v2802_v53 = vsel %vm415_vm6, %v5255_v52, 0.0 }
 0xb47   :  { %2803 = vadd.xlane.f32.xlu1 %v2802_v53 }
 0xb58   :  { %3368 = vrot.lane.b32.xlu1 %v5160_v17, %s4744_s7 }
 0xb5c   :  { %3292 = vrot.lane.b32.xlu0 %v5160_v17, %s4743_s20 }
 0xb6b   :  { %v2783_v55 = vpop.xlane.xlu0 %2782 }
 0xb6c   :  { %4358 = vrcp.f32 %v2783_v55  ;;  %v3896_v55 = vld [vmem:[#allocation22] ss:$0 sm:$0xff] }
 0xb79   :  { %v4359_v56 = vpop.eup %4358 }
 0xb7a   :  { %v2813_v57 = vmul.f32 %v4359_v56, %v5242_v13 }
 0xb7c   :  { %4182 = vmatmul.mubr.msk.f32.vlgmr.msra.gmra.mxu0 %vm415_vm6, %v2813_v57 }
 0xb7d   :  { %4190 = vmatpush3.msra.mxu0 %v2974_v58  ;;  %4191 = vmatprep.mubr.msk.f32.mxu0 %vm4740_vm5, %v4739_v44 }
 0xb7e   :  { %4199 = vmatprep.subr.mxu0 %v4739_v44 }
 0xbc1   :  { %v2789_v61 = vpop.xlane.xlu0 %2788 }
 0xbc2   :  { %4360 = vrcp.f32 %v2789_v61 }
 0xbc3   :  { %v2786_v17 = vpop.xlane.xlu1 %2785 }
 0xbc4   :  { %4362 = vrcp.f32 %v2786_v17 }
 0xbc7   :  { %v2792_v62 = vpop.xlane.xlu1 %2791 }
 0xbc8   :  { %4364 = vrcp.f32 %v2792_v62 }
 0xbcb   :  { %v2795_v63 = vpop.xlane.xlu0 %2794 }
 0xbcc   :  { %4366 = vrcp.f32 %v2795_v63  ;;  %v2798_v2 = vpop.xlane.xlu1 %2797 }
 0xbcd   :  { %4368 = vrcp.f32 %v2798_v2 }
 0xbcf   :  { %v4361_v3 = vpop.eup %4360  ;;  %v2801_v4 = vpop.xlane.xlu0 %2800 }
 0xbd0   :  { %4370 = vrcp.f32 %v2801_v4  ;;  %v2804_v5 = vpop.xlane.xlu1 %2803  ;;  %v2815_v6 = vmul.f32 %v4361_v3, %v4345_v36 }
 0xbd1   :  { %v4363_v7 = vpop.eup %4362  ;;  %4372 = vrcp.f32 %v2804_v5 }
 0xbd2   :  { %4192 = vmatmul.mubr.msk.f32.vlgmr.msra.gmra.mxu0 %vm415_vm6, %v2815_v6  ;;  %v2814_v8 = vmul.f32 %v4363_v7, %v4347_v40 }
 0xbd3   :  { %4200 = vmatpush3.msra.mxu0 %v3141_v54  ;;  %4201 = vmatprep.mubr.msk.f32.mxu0 %vm4740_vm5, %v4739_v44  ;;  %v3293_v15 = vpop.permute.xlu0 %3292 }
 0xbd4   :  { %4187 = vmatmul.mubr.msk.f32.vlgmr.msra.gmra.mxu1 %vm415_vm6, %v2814_v8  ;;  %4209 = vmatprep.subr.mxu0 %v4739_v44  ;;  %v3369_v19 = vpop.permute.xlu1 %3368  ;;  %v3612_v8 = vld [vmem:[#allocation23 + $0x18] sm:$0xff] }
 0xbd5   :  { %v4365_v9 = vpop.eup %4364  ;;  %4195 = vmatpush3.msra.mxu1 %v3050_v59  ;;  %4196 = vmatprep.mubr.msk.f32.mxu1 %vm4740_vm5, %v4739_v44 }
 0xbd6   :  { %4204 = vmatprep.subr.mxu1 %v4739_v44  ;;  %v2816_v10 = vmul.f32 %v4365_v9, %v4349_v42  ;;  %v3611_v9 = vld [vmem:[#allocation23 + $0x10] sm:$0xff] }
 0xbd8   :  { %4197 = vmatmul.mubr.msk.f32.vlgmr.msra.gmra.mxu1 %vm415_vm6, %v2816_v10  ;;  %v3610_v10 = vld [vmem:[#allocation23 + $0x8] sm:$0xff] }
 0xbd9   :  { %v4367_v11 = vpop.eup %4366  ;;  %4205 = vmatpush3.msra.mxu1 %v3217_v60  ;;  %4206 = vmatprep.mubr.msk.f32.mxu1 %vm4740_vm5, %v4739_v44 }
 0xbda   :  { %v4369_v12 = vpop.eup %4368  ;;  %4214 = vmatprep.subr.mxu1 %v4739_v44  ;;  %v2817_v13 = vmul.f32 %v4367_v11, %v4351_v45  ;;  %v3609_v11 = vld [vmem:[#allocation23] sm:$0xff] }
 0xbdb   :  { %v2818_v14 = vmul.f32 %v4369_v12, %v4353_v46  ;;  %v3710_v12 = vld [vmem:[%s5377_s18 + $0x38] sm:$0xff] }
 0xbdc   :  { %4202 = vmatmul.mubr.msk.f32.vlgmr.msra.gmra.mxu0 %vm415_vm6, %v2817_v13  ;;  %v3709_v13 = vld [vmem:[%s5377_s18 + $0x30] sm:$0xff] }
 0xbdd   :  { %v4371_v18 = vpop.eup %4370  ;;  %4207 = vmatmul.mubr.msk.f32.vlgmr.msra.gmra.mxu1 %vm415_vm6, %v2818_v14  ;;  %4210 = vmatpush3.msra.mxu0 %v3293_v15  ;;  %v3708_v14 = vld [vmem:[%s5377_s18 + $0x28] sm:$0xff]  ;;  %v3707_v15 = vld [vmem:[%s5377_s18 + $0x20] sm:$0xff] }
 0xbde   :  { %v4373_v16 = vpop.eup %4372  ;;  %4215 = vmatpush3.msra.mxu1 %v3369_v19  ;;  %4211 = vmatprep.mubr.msk.f32.mxu0 %vm4740_vm5, %v4739_v44  ;;  %v2819_v20 = vmul.f32 %v4371_v18, %v5253_v51 }
 0xbdf   :  { %4216 = vmatprep.mubr.msk.f32.mxu1 %vm4740_vm5, %v4739_v44  ;;  %v2820_v21 = vmul.f32 %v4373_v16, %v5255_v52  ;;  %4219 = vmatprep.subr.mxu0 %v3462_v24 }
 0xbe0   :  { %4212 = vmatmul.mubr.msk.f32.vlgmr.msra.gmra.mxu0 %vm415_vm6, %v2819_v20  ;;  %4230 = vmatprep.subr.mxu1 %v3612_v8 }
 0xbe1   :  { %4217 = vmatmul.mubr.msk.f32.vlgmr.msra.gmra.mxu1 %vm415_vm6, %v2820_v21  ;;  %4220 = vmatpush3.msra.mxu0 %v3462_v24 }
 0xbe2   :  { %4221 = vmatprep.subr.mxu0 %v3461_v26  ;;  %4231 = vmatpush3.msra.mxu1 %v3612_v8 }
 0xbe3   :  { %4222 = vmatpush3.msra.mxu0 %v3461_v26  ;;  %4232 = vmatprep.subr.mxu1 %v3611_v9 }
 0xbe4   :  { %4223 = vmatprep.subr.mxu0 %v3460_v28  ;;  %4233 = vmatpush3.msra.mxu1 %v3611_v9 }
 0xbe5   :  { %4224 = vmatpush3.msra.mxu0 %v3460_v28  ;;  %4234 = vmatprep.subr.mxu1 %v3610_v10 }
 0xbe6   :  { %4225 = vmatprep.subr.mxu0 %v3459_v30  ;;  %4235 = vmatpush3.msra.mxu1 %v3610_v10 }
 0xbe7   :  { %4226 = vmatpush3.msra.mxu0 %v3459_v30  ;;  %4236 = vmatprep.subr.mxu1 %v3609_v11 }
 0xbe8   :  { %4237 = vmatpush3.msra.mxu1 %v3609_v11  ;;  %4241 = vmatprep.subr.mxu0 %v3710_v12 }
 0xc3c   :  { %v2893_v22 = vpop.f32.mrf.mxu0 }
 0xc3e   :  { %v4183_v23 = vpop.f32.mrf.mxu0 }
 0xc92   :  { %v3045_v29 = vpop.f32.mrf.mxu0 }
 0xc93   :  { %3130 = vrot.lane.b32.xlu1 %v3045_v29, %s4724_s29 }
 0xc94   :  { %v2969_v47 = vpop.f32.mrf.mxu1  ;;  %v4193_v44 = vpop.f32.mrf.mxu0 }
 0xc95   :  { %3126 = vrot.lane.b32.xlu0 %v2969_v47, %s4723_s3 }
 0xc96   :  { %v4188_v31 = vpop.f32.mrf.mxu1 }
 0xc98   :  { %v3121_v32 = vpop.f32.mrf.mxu1 }
 0xc99   :  { %3134 = vrot.lane.b32.xlu1 %v3121_v32, %s4752_s16 }
 0xc9a   :  { %v4198_v1 = vpop.f32.mrf.mxu1 }
 0xc9b   :  { %v3897_v1 = vld [vmem:[#allocation10 + $0x2] ss:$0 sm:$0xff] }
 0xc9c   :  { %v3212_v33 = vpop.f32.mrf.mxu0 }
 0xc9d   :  { %v3288_v0 = vpop.f32.mrf.mxu1 }
 0xc9e   :  { %3445 = vrot.lane.b32.xlu0 %v3288_v0, %s4723_s3  ;;  %v4203_v34 = vpop.f32.mrf.mxu0 }
 0xc9f   :  { %v4208_v35 = vpop.f32.mrf.mxu1  ;;  %v3898_v34 = vld [vmem:[#allocation11 + $0x2] ss:$0 sm:$0xff] }
 0xca0   :  { %v3364_v36 = vpop.f32.mrf.mxu0 }
 0xca1   :  { %v3440_v37 = vpop.f32.mrf.mxu1 }
 0xca2   :  { %3449 = vrot.lane.b32.xlu0 %v3364_v36, %s4724_s29  ;;  %3453 = vrot.lane.b32.xlu1 %v3440_v37, %s4752_s16  ;;  %v4213_v38 = vpop.f32.mrf.mxu0 }
 0xca3   :  { %v4218_v39 = vpop.f32.mrf.mxu1 }
 0xd05   :  { %v3131_v40 = vpop.permute.xlu1 %3130 }
 0xd07   :  { %v3127_v41 = vpop.permute.xlu0 %3126 }
 0xd08   :  { %v3137_v42 = vsel %vm415_vm6, %v2893_v22, %v3127_v41  ;;  %v3706_v41 = vld [vmem:[%s5377_s18 + $0x18] sm:$0xff] }
 0xd09   :  { %v3138_v43 = vsel %vm1442_vm7, %v3137_v42, %v3131_v40  ;;  %v3705_v42 = vld [vmem:[%s5377_s18 + $0x10] sm:$0xff] }
 0xd0b   :  { %v3135_v45 = vpop.permute.xlu1 %3134 }
 0xd0c   :  { %v3139_v46 = vsel %vm1444_vm8, %v3138_v43, %v3135_v45  ;;  %v3704_v43 = vld [vmem:[%s5377_s18 + $0x8] sm:$0xff]  ;;  %v3703_v45 = vld [vmem:[%s5377_s18] sm:$0xff]  ;;  %s4753_s18 = smov [#allocation26]  }
 0xd0d   :  { %4227 = vmatprep.mubr.msk.f32.mxu0 %vm263_vm0, %v3139_v46  ;;  %v3899_v46 = vld [vmem:[#allocation25] ss:$0 sm:$0xff]  ;;  %s3809_s16 = sshll.u32 %s4753_s18, 4  ;;  %s3810_s16 = int_to_ptr.vmem [resolvable:$true] %s3809_s16 }
 0xd0e   :  { %s4682_s8 = scalar_lea.vmem %s3810_s16, 256  ;;  %p4687_p6 = scmp.lt.s32.totalorder %s3810_s16, %s3810_s16 }
 0xd0f   :  { %p4683_p5 = scmp.ne.s32.totalorder %s3810_s16, %s4682_s8  ;;  %p4688_p7 = scmp.lt.s32.totalorder %s4682_s8, %s4682_s8 }
 0xd10   :  { %v3446_v48 = vpop.permute.xlu0 %3445 }
 0xd11   :  { %v3456_v50 = vsel %vm415_vm6, %v3212_v33, %v3446_v48  ;;  %p4689_p8 = por %p4688_p7, %p4687_p6 }
 0xd13   :  { %p4690_p9 = pnand %p4689_p8, %p4683_p5 }
 0xd14   :  { %v3450_v51 = vpop.permute.xlu0 %3449  ;;  %v3454_v52 = vpop.permute.xlu1 %3453 }
 0xd15   :  { %v3457_v49 = vsel %vm1442_vm7, %v3456_v50, %v3450_v51 }
 0xd16   :  { %v3458_v53 = vsel %vm1444_vm8, %v3457_v49, %v3454_v52 }
 0xd17   :  { %4228 = vmatmul.mubr.msk.f32.vlgmr.msra.gmra.mxu0 %vm263_vm0, %v3458_v53 }
 0xd18   :  { %4242 = vmatpush3.msra.mxu0 %v3710_v12 }
 0xd19   :  { %4243 = vmatprep.subr.mxu0 %v3709_v13 }
 0xd1a   :  { %4244 = vmatpush3.msra.mxu0 %v3709_v13 }
 0xd1b   :  { %4245 = vmatprep.subr.mxu0 %v3708_v14 }
 0xd1c   :  { %4246 = vmatpush3.msra.mxu0 %v3708_v14 }
 0xd1d   :  { %4247 = vmatprep.subr.mxu0 %v3707_v15 }
 0xd1e   :  { %4248 = vmatpush3.msra.mxu0 %v3707_v15 }
 0xd1f   :  { %4249 = vmatprep.subr.mxu0 %v3706_v41 }
 0xd20   :  { %4250 = vmatpush3.msra.mxu0 %v3706_v41 }
 0xd21   :  { %4251 = vmatprep.subr.mxu0 %v3705_v42 }
 0xd22   :  { %4252 = vmatpush3.msra.mxu0 %v3705_v42 }
 0xd23   :  { %4253 = vmatprep.subr.mxu0 %v3704_v43 }
 0xd24   :  { %4254 = vmatpush3.msra.mxu0 %v3704_v43 }
 0xd25   :  { %4255 = vmatprep.subr.mxu0 %v3703_v45 }
 0xd26   :  { %4256 = vmatpush3.msra.mxu0 %v3703_v45 }
 0xdd7   :  { %v4229_v54 = vpop.f32.mrf.mxu0 }
 0xdd8   :  { %v3545_v56 = vadd.f32 %v4229_v54, %v5113_v25  ;;  %v3902_v54 = vld [vmem:[%s5378_s19] ss:$0 sm:$0xff] }
 0xdd9   :  { %v3535_v57 = vpop.f32.mrf.mxu0 }
 0xdda   :  { %v5307_v58 = vadd.f32 %v3896_v55, %v3545_v56  ;;  %v3544_v59 = vadd.f32 %v3535_v57, %v5116_v27 }
 0xddc   :  { %v5310_v60 = vadd.f32 %v3896_v55, %v3544_v59  ;;  %v3560_v61 = vsel %vm263_vm0, %v5307_v58, 0.0 }
 0xddd   :  { %3561 = vadd.xlane.f32.xlu1 %v3560_v61 }
 0xdde   :  { %v3557_v17 = vsel %vm263_vm0, %v5310_v60, 0.0 }
 0xddf   :  { %3558 = vadd.xlane.f32.xlu0 %v3557_v17 }
 0xe66   :  { %v3562_v62 = vpop.xlane.xlu1 %3561 }
 0xe67   :  { %v3564_v63 = vmul.f32 0.03125, %v3562_v62 }
 0xe68   :  { %v3559_v2 = vpop.xlane.xlu0 %3558 }
 0xe69   :  { %v3563_v3 = vmul.f32 0.03125, %v3559_v2  ;;  %v3566_v25 = vsub.f32 %v5307_v58, %v3564_v63 }
 0xe6b   :  { %v3565_v4 = vsub.f32 %v5310_v60, %v3563_v3  ;;  %v3568_v6 = vmul.f32 %v3566_v25, %v3566_v25  ;;  %v3600_v36 = vmul.f32 %v3897_v1, %v3566_v25 }
 0xe6d   :  { %v3567_v5 = vmul.f32 %v3565_v4, %v3565_v4  ;;  %v3572_v7 = vsel %vm263_vm0, %v3568_v6, 0.0  ;;  %v3599_v33 = vmul.f32 %v3897_v1, %v3565_v4 }
 0xe6f   :  { %v3569_v27 = vsel %vm263_vm0, %v3567_v5, 0.0 }
 0xe70   :  { %3570 = vadd.xlane.f32.xlu0 %v3569_v27 }
 0xe74   :  { %3573 = vadd.xlane.f32.xlu0 %v3572_v7 }
 0xef9   :  { %v3571_v18 = vpop.xlane.xlu0 %3570 }
 0xefa   :  { %v3575_v19 = vmul.f32 0.032258064, %v3571_v18 }
 0xefc   :  { %4374 = vrsqrt.f32 %v3575_v19  ;;  %vm3579_vm13 = vcmp.eq.f32.partialorder %v3575_v19, inf  ;;  %v3582_v23 = vand.u32 2147483648, %v3575_v19  ;;  %vm3581_vm14 = vcmp.eq.f32.partialorder %v3575_v19, 0.0 }
 0xefd   :  { %v3574_v16 = vpop.xlane.xlu0 %3573 }
 0xefe   :  { %v3576_v20 = vmul.f32 0.032258064, %v3574_v16 }
 0xf00   :  { %4376 = vrsqrt.f32 %v3576_v20  ;;  %vm3586_vm15 = vcmp.eq.f32.partialorder %v3576_v20, inf  ;;  %v3589_v44 = vand.u32 2147483648, %v3576_v20  ;;  %vm3588_vm1 = vcmp.eq.f32.partialorder %v3576_v20, 0.0 }
 0xf09   :  { %v4375_v21 = vpop.eup %4374 }
 0xf0a   :  { %v3578_v22 = vmul.f32 %v4375_v21, %v3575_v19 }
 0xf0c   :  { %v3580_v24 = vsel %vm3579_vm13, %v3575_v19, %v3578_v22 }
 0xf0d   :  { %v4377_v26 = vpop.eup %4376  ;;  %v3583_v28 = vsel %vm3581_vm14, %v3582_v23, %v3580_v24 }
 0xf0e   :  { %v3591_v29 = vadd.f32 1e-06, %v3583_v28  ;;  %v3585_v47 = vmul.f32 %v4377_v26, %v3576_v20 }
 0xf10   :  { %4378 = vrcp.f32 %v3591_v29  ;;  %v3587_v30 = vsel %vm3586_vm15, %v3576_v20, %v3585_v47 }
 0xf11   :  { %v3590_v31 = vsel %vm3588_vm1, %v3589_v44, %v3587_v30 }
 0xf12   :  { %v3592_v32 = vadd.f32 1e-06, %v3590_v31 }
 0xf14   :  { %4380 = vrcp.f32 %v3592_v32 }
 0xf1d   :  { %v4379_v0 = vpop.eup %4378 }
 0xf1e   :  { %v3601_v35 = vmul.f32 %v4379_v0, %v3599_v33 }
 0xf20   :  { %v3607_v37 = vadd.f32 %v3898_v34, %v3601_v35 }
 0xf21   :  { %v4381_v38 = vpop.eup %4380 }
 0xf22   :  { %v3602_v39 = vmul.f32 %v4381_v38, %v3600_v36  ;;  %4238 = vmatprep.mubr.msk.f32.mxu1 %vm263_vm0, %v3607_v37 }
 0xf24   :  { %v3608_v40 = vadd.f32 %v3898_v34, %v3602_v39 }
 0xf26   :  { %4239 = vmatmul.mubr.msk.f32.vlgmr.msra.gmra.mxu1 %vm263_vm0, %v3608_v40 }
 0xfe6   :  { %v4240_v48 = vpop.f32.mrf.mxu1 }
 0xfe7   :  { %v3698_v50 = vadd.f32 %v4240_v48, %v3899_v46 }
 0xfe8   :  { %v3692_v51 = vpop.f32.mrf.mxu1 }
 0xfe9   :  { %v3693_v52 = vadd.f32 %v3899_v46, %v3692_v51  ;;  %v3702_v53 = vmax.f32 %v3698_v50, 0.0 }
 0xfeb   :  { %v3701_v49 = vmax.f32 %v3693_v52, 0.0 }
 0xfed   :  { %4257 = vmatprep.mubr.msk.f32.mxu0 %vm3718_vm2, %v3701_v49 }
 0xfee   :  { %4258 = vmatmul.mubr.msk.f32.vlgmr.msra.gmra.mxu0 %vm3718_vm2, %v3702_v53 }
0x10ae   :  { %v4259_v55 = vpop.f32.mrf.mxu0 }
0x10af   :  { %v3797_v56 = vadd.f32 %v4259_v55, %v3902_v54 }
0x10b0   :  { %v3791_v57 = vpop.f32.mrf.mxu0 }
0x10b1   :  { %v3801_v59 = vadd.f32 %v3797_v56, %v5307_v58  ;;  %v3792_v61 = vadd.f32 %v3902_v54, %v3791_v57 }
0x10b3   :  { %3803 = vst.msk [vmem:[#allocation26 + $0x8] sm:$0xff] %vm263_vm0, %v3801_v59  ;;  %v3800_v17 = vadd.f32 %v3792_v61, %v5310_v60 }
0x10b5   :  { %3802 = vst.msk [vmem:[#allocation26] sm:$0xff] %vm263_vm0, %v3800_v17 }
0x10b6   :  { %4693 = shalt.err (!%p4690_p9)
}
0x10b7   :  { %s5391_s27 = sld [smem:[#allocation41_spill]] }
0x10bd   :  { %3815 = dma.vmem_to_hbm [thread:$0]  %s3810_s16, 256, %s5391_s27, [#allocation4], %s4722_s25, %s4722_s25, %s4723_s3  }
0x10be   :  { %4718 = dma.done.wait [#allocation4], 256  }
0x10bf   :  { %4719 = vsyncadd [#allocation4], 4294967040 }
0x10c0   :  { %3819 = vsyncpa [#allocation3], 1 }
0x10c1   :  { %3820 = vsyncpa [#allocation6], 1 }
0x10c2   :  { %3821 = vsyncpa [#allocation9], 1 }
0x10c3   :  { %3822 = vsyncpa [#allocation12], 1 }
0x10c4   :  { %3823 = vsyncpa [#allocation15], 1 }
0x10c5   :  { %3824 = vsyncpa [#allocation18], 1 }
0x10c6   :  { %3825 = vsyncpa [#allocation21], 1 }
0x10c7   :  { %3826 = vsyncpa [#allocation24], 1 }
0x10c8   :  { %3827 = vsyncpa [#allocation4], 1 }

</bundles_post_ra>
